<compile_context>
chip_gen: v7x
topology: tpu7x:2x2x1
jax: 0.10.0
libtpu: 0.0.40
codegen_flags: <defaults>
</compile_context>

<pallas_src>
import functools

import numpy as np
import jax
import jax.numpy as jnp
from jax import lax
from jax.experimental import pallas as pl
from jax.experimental.pallas import tpu as pltpu


# ----------------------------------------------------------------------------
# Kernel 1: whole decode loop in a single invocation (no grid).
# ----------------------------------------------------------------------------
def _decode_kernel(emb_ref, tgt_ref, enc_ref,
                   pre_w_ref, pre_b_ref,
                   hid_w_ref, comb_att_ref,
                   wi_ref, bi_ref, bhn_ref,
                   out_w_ref, out_b_ref,
                   step_sel_ref, w_label_ref,
                   alpha_ref, loss_ref,
                   pre_scr, attn_scr, h_scr,
                   *, steps, bs, H, L):
    f32 = jnp.float32
    bf16 = jnp.bfloat16
    R = steps * bs

    # ---- hoisted, recurrence-independent GEMM: embedded-input contributions
    # to the attn linear and attn_combine linear, for ALL steps at once.
    emb_all = emb_ref[...]                                       # (R, H) bf16
    pre_scr[...] = (jnp.dot(emb_all, pre_w_ref[...],
                            preferred_element_type=f32) + pre_b_ref[...])

    # loop-invariant operands (everything is VMEM-resident)
    enc = enc_ref[...]                                           # (bs, L, H) bf16
    hid_w = hid_w_ref[...]          # (H, L+3H) bf16: [attn_hid | W_hr | W_hz | W_hn]
    comb_att = comb_att_ref[...]    # (H, H)  bf16
    wi = wi_ref[...]                # (H, 3H) bf16: [W_ir | W_iz | W_in]
    bi = bi_ref[...]                # (1, 3H) f32:  (b_ir+b_hr | b_iz+b_hz | b_in)
    bhn = bhn_ref[...]              # (1, H)  f32

    # ---- serial GRU recurrence: only h-dependent work stays in the loop ----
    def step(s, carry):
        h, h_bf = carry                                          # (bs, H) f32 / bf16
        row0 = pl.multiple_of(s * bs, bs)

        pre = pre_scr[pl.ds(row0, bs), :]                        # (bs, L+H) f32
        pre_a = pre[:, :L]                                       # emb @ Wa + b_a
        pre_c = pre[:, L:]                                       # emb @ Wc + b_c

        # one fused wide-N matmul on h: attn hidden term + the 3 GRU h-gates
        hterm = jnp.dot(h_bf, hid_w, preferred_element_type=f32)  # (bs, L+3H)
        attn_h = hterm[:, :L]
        h_r = hterm[:, L:L + H]
        h_z = hterm[:, L + H:L + 2 * H]
        h_n = hterm[:, L + 2 * H:]

        # attention softmax.  NOTE: approx reciprocal (EUP) -> weights sum to
        # ~1 with ~1e-4 relative error vs. exact softmax (documented).
        logits = pre_a + attn_h
        logits = logits - jnp.max(logits, axis=1, keepdims=True)
        e = jnp.exp(logits)
        attn_w = e * pl.reciprocal(jnp.sum(e, axis=1, keepdims=True), approx=True)
        attn_scr[pl.ds(row0, bs), :] = attn_w                    # stays in VMEM

        # attention-weighted sum of encoder outputs (batched M=1 MXU matmul;
        # at small bs/L a VPU multiply + reduce may win -- benchmark at scale)
        attn_applied = jnp.einsum('bql,blh->bqh',
                                  attn_w.astype(bf16)[:, None, :], enc,
                                  preferred_element_type=f32)[:, 0, :]   # (bs, H)

        # attn_combine + relu (embedded contribution precomputed in pre_c)
        x = jnp.maximum(
            pre_c + jnp.dot(attn_applied.astype(bf16), comb_att,
                            preferred_element_type=f32), 0.0)

        # GRU cell (PyTorch gate order r, z, n), input gates fused wide-N
        xi = jnp.dot(x.astype(bf16), wi, preferred_element_type=f32) + bi
        r = jax.nn.sigmoid(xi[:, :H] + h_r)
        z = jax.nn.sigmoid(xi[:, H:2 * H] + h_z)
        n = jnp.tanh(xi[:, 2 * H:] + r * (h_n + bhn))
        h_new = (1.0 - z) * n + z * h                            # (bs, H) f32

        h_scr[pl.ds(row0, bs), :] = h_new                        # for post-loop GEMM
        return h_new, h_new.astype(bf16)                         # single bf16 cast/step

    h0 = jnp.zeros((bs, H), f32)
    lax.fori_loop(0, steps, step, (h0, h0.astype(bf16)),
                  unroll=min(4, steps))

    # ---- hoisted output projection + CE over ALL steps (one big GEMM) ----
    logits = (jnp.dot(h_scr[...].astype(bf16), out_w_ref[...],
                      preferred_element_type=f32) + out_b_ref[...])   # (R, V) f32
    V = logits.shape[1]
    rowmax = jnp.max(logits, axis=1, keepdims=True)
    lse = jnp.log(jnp.sum(jnp.exp(logits - rowmax), axis=1, keepdims=True))
    tgt = tgt_ref[...]                                           # (R, 1) int32
    sel = lax.broadcasted_iota(jnp.int32, (R, V), 1) == tgt
    tgt_logit = jnp.sum(jnp.where(sel, logits, 0.0), axis=1, keepdims=True)
    nll = rowmax + lse - tgt_logit                               # (R, 1)
    mask = (tgt != 0).astype(f32)                                # ignore_index == 0
    # per-step mean over non-ignored targets, summed over steps.  An all-ignored
    # step gives 0/0 -> NaN, exactly like PyTorch's CrossEntropyLoss.
    num = jnp.dot(step_sel_ref[...], nll * mask, preferred_element_type=f32)
    den = jnp.dot(step_sel_ref[...], mask, preferred_element_type=f32)
    loss_ref[...] = jnp.reshape(jnp.sum(num / den), (1, 1))

    # ---- per-(batch, word-span) attention-map sums, fully in-kernel ----
    alpha_ref[...] = jnp.dot(w_label_ref[...], attn_scr[...],
                             preferred_element_type=f32)         # (num_labels, L)


def decode_sequence(packed, enc_bf, in_ids, tgt_ids, step_sel, w_label):
    steps, bs = in_ids.shape
    R = steps * bs
    H = packed["wi"].shape[0]
    L = packed["hid_w"].shape[1] - 3 * H
    num_labels = w_label.shape[0]

    # embedding lookup for every step at once (int ids -> row gather, no
    # one-hot slabs).  Dropout = identity (eval mode).
    emb_all = jnp.take(packed["emb"], in_ids.reshape(R), axis=0)      # (R, H) bf16

    operands = (emb_all, tgt_ids.reshape(R, 1).astype(jnp.int32), enc_bf,
                packed["pre_w"], packed["pre_b"],
                packed["hid_w"], packed["comb_att"],
                packed["wi"], packed["bi"], packed["bh_n"],
                packed["out_w"], packed["out_b"],
                step_sel, w_label)

    # explicit scoped-VMEM limit (defaults: 16/32 MiB on v5e/v6e) with headroom
    resident = sum(int(np.prod(x.shape)) * x.dtype.itemsize for x in operands)
    resident += R * (L + H) * 4 + R * L * 4 + R * H * 4               # scratch
    resident += num_labels * L * 4 + 4                                # outputs
    vmem_limit = int(min(120 << 20, max(32 << 20, 2 * resident + (4 << 20))))

    vmem = pl.BlockSpec(memory_space=pltpu.MemorySpace.VMEM)
    alpha, loss = pl.pallas_call(
        functools.partial(_decode_kernel, steps=steps, bs=bs, H=H, L=L),
        out_shape=(jax.ShapeDtypeStruct((num_labels, L), jnp.float32),
                   jax.ShapeDtypeStruct((1, 1), jnp.float32)),
        in_specs=[vmem] * len(operands),
        out_specs=(vmem, vmem),
        scratch_shapes=[pltpu.VMEM((R, L + H), jnp.float32),   # pre_attn|pre_comb
                        pltpu.VMEM((R, L), jnp.float32),       # attention maps
                        pltpu.VMEM((R, H), jnp.float32)],      # hidden states
        compiler_params=pltpu.CompilerParams(vmem_limit_bytes=vmem_limit),
    )(*operands)
    return alpha, loss[0, 0]


# ----------------------------------------------------------------------------
# Kernel 2: per-label min-max normalisation of the summed attention map and
# elementwise re-weighting of the matching encode row.  Lane-dense layout:
# channels last (c = hidden_size, a 128-multiple at realistic sizes).
# ----------------------------------------------------------------------------
def _weight_kernel(alpha_ref, enc_ref, out_ref):
    a = alpha_ref[...]                                  # (N, T, 1) f32
    amin = jnp.min(a, axis=1, keepdims=True)
    amax = jnp.max(a, axis=1, keepdims=True)
    # NOTE: divides by 0 for a constant map — same hazard as the PyTorch code.
    w = (a - amin) / (amax - amin)                      # (N, T, 1)
    out_ref[...] = enc_ref[...] * w                     # (N, T, c)


def weight_encode(alpha_nt1, enc_ntc):
    N, T, _ = alpha_nt1.shape
    c = enc_ntc.shape[2]
    vmem = pl.BlockSpec(memory_space=pltpu.MemorySpace.VMEM)
    return pl.pallas_call(
        _weight_kernel,
        out_shape=jax.ShapeDtypeStruct((N, T, c), jnp.float32),
        in_specs=[vmem, vmem],
        out_specs=vmem,
    )(alpha_nt1, enc_ntc)


# ----------------------------------------------------------------------------
# Full module forward (teacher-forcing branch), glue in plain JAX.
# ----------------------------------------------------------------------------
def attn_decoder_forward(packed, encode, text, text_length, word_idx):
    bs, c, hsp, wsp = encode.shape
    T = hsp * wsp
    H = packed["wi"].shape[0]
    L = packed["hid_w"].shape[1] - 3 * H
    assert c == H, "encoder channels must equal hidden_size"
    assert L == T, "max_length must equal h*w for the attention bmm"

    steps = text.shape[1] - 1                           # teacher-forcing steps
    in_ids = jnp.transpose(text[:, :-1], (1, 0))        # (steps, bs)
    tgt_ids = jnp.transpose(text[:, 1:], (1, 0))        # (steps, bs)

    # NCHW -> (bs, T, c): lane-dense channels; bf16 copy for the MXU
    enc_btc = jnp.transpose(encode.reshape(bs, c, T), (0, 2, 1))       # f32
    enc_bf = enc_btc.astype(jnp.bfloat16)

    # static selector matrices (numpy, shapes depend only on python metadata)
    step_sel = np.repeat(np.eye(steps, dtype=np.float32), bs, axis=1)  # (steps, R)
    label_rows, batch_ids = [], []
    for i, _length in enumerate(text_length):
        for (h_idx, t_idx) in word_idx[i]:
            row = np.zeros((steps, bs), np.float32)
            row[h_idx:t_idx + 1, i] = 1.0               # sum of attn maps over the span
            label_rows.append(row.reshape(-1))
            batch_ids.append(i)
    w_label = np.stack(label_rows).astype(np.float32)   # (num_labels, steps*bs)
    num_labels = w_label.shape[0]

    alpha, loss = decode_sequence(packed, enc_bf, in_ids, tgt_ids,
                                  jnp.asarray(step_sel), jnp.asarray(w_label))

    # per-label min-max re-weighting of the matching encode rows (kernel 2)
    enc_rows = jnp.take(enc_btc, jnp.asarray(batch_ids, jnp.int32), axis=0)  # (N,T,c)
    weighted = weight_encode(alpha.reshape(num_labels, T, 1), enc_rows)
    new_rows = jnp.transpose(weighted, (0, 2, 1)).reshape(num_labels, c, hsp, wsp)
    new_encode = jnp.concatenate([encode, new_rows], axis=0)
    return loss, new_encode


# ----------------------------------------------------------------------------
# Parameters: torch-like init + packing into fused, MXU-friendly operands.
# ----------------------------------------------------------------------------
def init_params(key, H, V, L):
    """Torch-like parameters (nn.Linear weights stored transposed: y = x @ W)."""
    ks = jax.random.split(key, 13)
    f = lambda k, shp: jax.random.normal(k, shp, jnp.float32) * 0.1
    return dict(
        emb=f(ks[0], (V, H)),                       # nn.Embedding
        attn_w_emb=f(ks[1], (H, L)),                # attn Linear, embedded half
        attn_w_hid=f(ks[2], (H, L)),                # attn Linear, hidden half
        attn_b=f(ks[3], (1, L)),
        comb_w_emb=f(ks[4], (H, H)),                # attn_combine, embedded half
        comb_w_att=f(ks[5], (H, H)),                # attn_combine, attn half
        comb_b=f(ks[6], (1, H)),
        gru_wi=f(ks[7], (3, H, H)),                 # gate order r, z, n
        gru_wh=f(ks[8], (3, H, H)),
        gru_bi=f(ks[9], (3, 1, H)),
        gru_bh=f(ks[10], (3, 1, H)),
        out_w=f(ks[11], (H, V)),
        out_b=f(ks[12], (1, V)),
    )


def pack_params(p):
    """Fuse weights into the wide-N bf16 operands the kernel consumes (done once)."""
    bf = jnp.bfloat16
    return dict(
        emb=p["emb"].astype(bf),
        # embedded-input contributions of attn and attn_combine, fused: (H, L+H)
        pre_w=jnp.concatenate([p["attn_w_emb"], p["comb_w_emb"]], axis=1).astype(bf),
        pre_b=jnp.concatenate([p["attn_b"], p["comb_b"]], axis=1),
        # hidden-state matmuls fused: [attn_hid | W_hr | W_hz | W_hn]  (H, L+3H)
        hid_w=jnp.concatenate([p["attn_w_hid"], p["gru_wh"][0],
                               p["gru_wh"][1], p["gru_wh"][2]], axis=1).astype(bf),
        comb_att=p["comb_w_att"].astype(bf),
        # input-side GRU gates fused: [W_ir | W_iz | W_in]  (H, 3H)
        wi=jnp.concatenate([p["gru_wi"][0], p["gru_wi"][1], p["gru_wi"][2]],
                           axis=1).astype(bf),
        # b_hr / b_hz folded into the fused input bias; b_hn kept separate
        bi=jnp.concatenate([p["gru_bi"][0] + p["gru_bh"][0],
                            p["gru_bi"][1] + p["gru_bh"][1],
                            p["gru_bi"][2]], axis=1),
        bh_n=p["gru_bh"][2],
        out_w=p["out_w"].astype(bf),
        out_b=p["out_b"],
    )


if __name__ == "__main__":
    bs = 2                  # batch
    H = 32                  # hidden_size
    V = 16                  # output_size (vocab)
    h_sp, w_sp = 2, 4       # encode spatial dims -> T = 8
    L = h_sp * w_sp         # max_length must equal h*w
    c = H                   # encoder channels must equal hidden_size
    Tseq = 5                # text sequence length -> 4 decode steps

    key = jax.random.PRNGKey(0)
    k1, k2, k3 = jax.random.split(key, 3)
    params = init_params(k1, H, V, L)
    packed = pack_params(params)
    encode = jax.random.normal(k2, (bs, c, h_sp, w_sp), jnp.float32)
    # targets in [1, V) so ignore_index=0 never fires (per-step denominator = bs)
    text = jax.random.randint(k3, (bs, Tseq), 1, V).astype(jnp.int32)

    text_length = [4, 4]                      # <= Tseq - 1 decode steps
    word_idx = [[(0, 1), (2, 3)], [(0, 3)]]   # (h_idx, t_idx) spans per batch

    loss, new_encode = attn_decoder_forward(packed, encode, text,
                                            text_length, word_idx)
    jax.block_until_ready((loss, new_encode))
    assert new_encode.shape == (bs + 3, c, h_sp, w_sp)
    assert bool(jnp.isfinite(loss))
    print("KERNEL_OK")
</pallas_src>

<mosaic_0001>
module attributes {stable_mosaic.version = 11 : i64} {
  func.func @_decode_kernel(%arg0: memref<8x32xbf16, #tpu.memory_space<vmem>>, %arg1: memref<8x1xi32, #tpu.memory_space<vmem>>, %arg2: memref<2x8x32xbf16, #tpu.memory_space<vmem>>, %arg3: memref<32x40xbf16, #tpu.memory_space<vmem>>, %arg4: memref<1x40xf32, #tpu.memory_space<vmem>>, %arg5: memref<32x104xbf16, #tpu.memory_space<vmem>>, %arg6: memref<32x32xbf16, #tpu.memory_space<vmem>>, %arg7: memref<32x96xbf16, #tpu.memory_space<vmem>>, %arg8: memref<1x96xf32, #tpu.memory_space<vmem>>, %arg9: memref<1x32xf32, #tpu.memory_space<vmem>>, %arg10: memref<32x16xbf16, #tpu.memory_space<vmem>>, %arg11: memref<1x16xf32, #tpu.memory_space<vmem>>, %arg12: memref<4x8xf32, #tpu.memory_space<vmem>>, %arg13: memref<3x8xf32, #tpu.memory_space<vmem>>, %arg14: memref<3x8xf32, #tpu.memory_space<vmem>>, %arg15: memref<1x1xf32, #tpu.memory_space<vmem>>, %arg16: memref<8x40xf32, #tpu.memory_space<vmem>>, %arg17: memref<8x8xf32, #tpu.memory_space<vmem>>, %arg18: memref<8x32xf32, #tpu.memory_space<vmem>>) attributes {dimension_semantics = [], scalar_prefetch = 0 : i64, scratch_operands = 3 : i64, tpu.core_type = #tpu.core_type<tc>} {
    %c0 = arith.constant 0 : index
    %c0_0 = arith.constant 0 : index
    %0 = vector.load %arg0[%c0, %c0_0] : memref<8x32xbf16, #tpu.memory_space<vmem>>, vector<8x32xbf16>
    %c0_1 = arith.constant 0 : index
    %c0_2 = arith.constant 0 : index
    %1 = vector.load %arg3[%c0_1, %c0_2] : memref<32x40xbf16, #tpu.memory_space<vmem>>, vector<32x40xbf16>
    %cst = arith.constant dense<0.000000e+00> : vector<8x40xf32>
    %2 = tpu.matmul %0, %1, %cst {dimension_numbers = #tpu.dot_dimension_numbers<[1], [0], [0], [1], [0, 0, 1, 1], [], []>} : vector<8x32xbf16>, vector<32x40xbf16>, vector<8x40xf32> -> vector<8x40xf32>
    %c0_3 = arith.constant 0 : index
    %c0_4 = arith.constant 0 : index
    %3 = vector.load %arg4[%c0_3, %c0_4] : memref<1x40xf32, #tpu.memory_space<vmem>>, vector<1x40xf32>
    %4 = vector.broadcast %3 : vector<1x40xf32> to vector<8x40xf32>
    %5 = arith.addf %2, %4 : vector<8x40xf32>
    %c0_5 = arith.constant 0 : index
    %c0_6 = arith.constant 0 : index
    %6 = vector.load %arg16[%c0_5, %c0_6] : memref<8x40xf32, #tpu.memory_space<vmem>>, vector<8x40xf32>
    tpu.vector_store %arg16[%c0_5, %c0_6], %5 {strides = array<i32>} : memref<8x40xf32, #tpu.memory_space<vmem>>, vector<8x40xf32>,
    %c0_7 = arith.constant 0 : index
    %c0_8 = arith.constant 0 : index
    %c0_9 = arith.constant 0 : index
    %7 = vector.load %arg2[%c0_7, %c0_8, %c0_9] : memref<2x8x32xbf16, #tpu.memory_space<vmem>>, vector<2x8x32xbf16>
    %c0_10 = arith.constant 0 : index
    %c0_11 = arith.constant 0 : index
    %8 = vector.load %arg5[%c0_10, %c0_11] : memref<32x104xbf16, #tpu.memory_space<vmem>>, vector<32x104xbf16>
    %c0_12 = arith.constant 0 : index
    %c0_13 = arith.constant 0 : index
    %9 = vector.load %arg6[%c0_12, %c0_13] : memref<32x32xbf16, #tpu.memory_space<vmem>>, vector<32x32xbf16>
    %c0_14 = arith.constant 0 : index
    %c0_15 = arith.constant 0 : index
    %10 = vector.load %arg7[%c0_14, %c0_15] : memref<32x96xbf16, #tpu.memory_space<vmem>>, vector<32x96xbf16>
    %c0_16 = arith.constant 0 : index
    %c0_17 = arith.constant 0 : index
    %11 = vector.load %arg8[%c0_16, %c0_17] : memref<1x96xf32, #tpu.memory_space<vmem>>, vector<1x96xf32>
    %c0_18 = arith.constant 0 : index
    %c0_19 = arith.constant 0 : index
    %12 = vector.load %arg9[%c0_18, %c0_19] : memref<1x32xf32, #tpu.memory_space<vmem>>, vector<1x32xf32>
    %cst_20 = arith.constant 0.000000e+00 : f32
    %13 = vector.broadcast %cst_20 : f32 to vector<2x32xf32>
    %14 = arith.truncf %13 : vector<2x32xf32> to vector<2x32xbf16>
    %c0_i32 = arith.constant 0 : i32
    %c2_i32 = arith.constant 2 : i32
    %15 = arith.muli %c0_i32, %c2_i32 : i32
    %16 = tpu.assume_multiple %15, 2 : i32
    %17 = arith.index_cast %16 : i32 to index
    %c0_21 = arith.constant 0 : index
    %18 = vector.load %arg16[%17, %c0_21] : memref<8x40xf32, #tpu.memory_space<vmem>>, vector<2x40xf32>
    %19 = vector.extract_strided_slice %18 {offsets = [0, 0], sizes = [2, 8], strides = [1, 1]} : vector<2x40xf32> to vector<2x8xf32>
    %20 = vector.extract_strided_slice %18 {offsets = [0, 8], sizes = [2, 32], strides = [1, 1]} : vector<2x40xf32> to vector<2x32xf32>
    %cst_22 = arith.constant dense<0.000000e+00> : vector<2x104xf32>
    %21 = tpu.matmul %14, %8, %cst_22 {dimension_numbers = #tpu.dot_dimension_numbers<[1], [0], [0], [1], [0, 0, 1, 1], [], []>} : vector<2x32xbf16>, vector<32x104xbf16>, vector<2x104xf32> -> vector<2x104xf32>
    %22 = vector.extract_strided_slice %21 {offsets = [0, 0], sizes = [2, 8], strides = [1, 1]} : vector<2x104xf32> to vector<2x8xf32>
    %23 = vector.extract_strided_slice %21 {offsets = [0, 8], sizes = [2, 32], strides = [1, 1]} : vector<2x104xf32> to vector<2x32xf32>
    %24 = vector.extract_strided_slice %21 {offsets = [0, 40], sizes = [2, 32], strides = [1, 1]} : vector<2x104xf32> to vector<2x32xf32>
    %25 = vector.extract_strided_slice %21 {offsets = [0, 72], sizes = [2, 32], strides = [1, 1]} : vector<2x104xf32> to vector<2x32xf32>
    %26 = arith.addf %19, %22 : vector<2x8xf32>
    %cst_23 = arith.constant dense<0xFF800000> : vector<2xf32>
    %27 = vector.multi_reduction <maximumf>, %26, %cst_23 [1] : vector<2x8xf32> to vector<2xf32>
    %28 = vector.shape_cast %27 : vector<2xf32> to vector<2x1xf32>
    %29 = vector.broadcast %28 : vector<2x1xf32> to vector<2x8xf32>
    %30 = arith.subf %26, %29 : vector<2x8xf32>
    %31 = math.exp %30 : vector<2x8xf32>
    %cst_24 = arith.constant dense<0.000000e+00> : vector<2xf32>
    %32 = vector.multi_reduction <add>, %31, %cst_24 [1] : vector<2x8xf32> to vector<2xf32>
    %33 = vector.shape_cast %32 : vector<2xf32> to vector<2x1xf32>
    %34 = tpu.reciprocal %33 {approx = true} : vector<2x1xf32> -> vector<2x1xf32>
    %35 = vector.broadcast %34 : vector<2x1xf32> to vector<2x8xf32>
    %36 = arith.mulf %31, %35 : vector<2x8xf32>
    %37 = arith.index_cast %16 : i32 to index
    %c0_25 = arith.constant 0 : index
    %38 = vector.load %arg17[%37, %c0_25] : memref<8x8xf32, #tpu.memory_space<vmem>>, vector<2x8xf32>
    tpu.vector_store %arg17[%37, %c0_25], %36 {strides = array<i32>} : memref<8x8xf32, #tpu.memory_space<vmem>>, vector<2x8xf32>,
    %39 = arith.truncf %36 : vector<2x8xf32> to vector<2x8xbf16>
    %40 = vector.shape_cast %39 : vector<2x8xbf16> to vector<2x1x8xbf16>
    "tpu.trace_start"() <{level = 10 : i32, message = "bql,blh->bqh"}> : () -> ()
    %cst_26 = arith.constant dense<0.000000e+00> : vector<2x1x32xf32>
    %41 = tpu.matmul %40, %7, %cst_26 {dimension_numbers = #tpu.dot_dimension_numbers<[2], [1], [1], [2], [0, 0, 0, 1, 1, 2], [0], [0]>} : vector<2x1x8xbf16>, vector<2x8x32xbf16>, vector<2x1x32xf32> -> vector<2x1x32xf32>
    "tpu.trace_stop"() : () -> ()
    %42 = vector.shape_cast %41 : vector<2x1x32xf32> to vector<2x32xf32>
    %43 = arith.truncf %42 : vector<2x32xf32> to vector<2x32xbf16>
    %cst_27 = arith.constant dense<0.000000e+00> : vector<2x32xf32>
    %44 = tpu.matmul %43, %9, %cst_27 {dimension_numbers = #tpu.dot_dimension_numbers<[1], [0], [0], [1], [0, 0, 1, 1], [], []>} : vector<2x32xbf16>, vector<32x32xbf16>, vector<2x32xf32> -> vector<2x32xf32>
    %45 = arith.addf %20, %44 : vector<2x32xf32>
    %cst_28 = arith.constant 0.000000e+00 : f32
    %46 = vector.broadcast %cst_28 : f32 to vector<2x32xf32>
    %47 = arith.maximumf %45, %46 : vector<2x32xf32>
    %48 = arith.truncf %47 : vector<2x32xf32> to vector<2x32xbf16>
    %cst_29 = arith.constant dense<0.000000e+00> : vector<2x96xf32>
    %49 = tpu.matmul %48, %10, %cst_29 {dimension_numbers = #tpu.dot_dimension_numbers<[1], [0], [0], [1], [0, 0, 1, 1], [], []>} : vector<2x32xbf16>, vector<32x96xbf16>, vector<2x96xf32> -> vector<2x96xf32>
    %50 = vector.broadcast %11 : vector<1x96xf32> to vector<2x96xf32>
    %51 = arith.addf %49, %50 : vector<2x96xf32>
    %52 = vector.extract_strided_slice %51 {offsets = [0, 0], sizes = [2, 32], strides = [1, 1]} : vector<2x96xf32> to vector<2x32xf32>
    %53 = arith.addf %52, %23 : vector<2x32xf32>
    %54 = arith.negf %53 : vector<2x32xf32>
    %55 = math.exp %54 : vector<2x32xf32>
    %cst_30 = arith.constant 1.000000e+00 : f32
    %56 = vector.broadcast %cst_30 : f32 to vector<2x32xf32>
    %57 = arith.addf %56, %55 : vector<2x32xf32>
    %58 = arith.divf %56, %57 : vector<2x32xf32>
    %59 = vector.extract_strided_slice %51 {offsets = [0, 32], sizes = [2, 32], strides = [1, 1]} : vector<2x96xf32> to vector<2x32xf32>
    %60 = arith.addf %59, %24 : vector<2x32xf32>
    %61 = arith.negf %60 : vector<2x32xf32>
    %62 = math.exp %61 : vector<2x32xf32>
    %cst_31 = arith.constant 1.000000e+00 : f32
    %63 = vector.broadcast %cst_31 : f32 to vector<2x32xf32>
    %64 = arith.addf %63, %62 : vector<2x32xf32>
    %65 = arith.divf %63, %64 : vector<2x32xf32>
    %66 = vector.extract_strided_slice %51 {offsets = [0, 64], sizes = [2, 32], strides = [1, 1]} : vector<2x96xf32> to vector<2x32xf32>
    %67 = vector.broadcast %12 : vector<1x32xf32> to vector<2x32xf32>
    %68 = arith.addf %25, %67 : vector<2x32xf32>
    %69 = arith.mulf %58, %68 : vector<2x32xf32>
    %70 = arith.addf %66, %69 : vector<2x32xf32>
    %71 = math.tanh %70 : vector<2x32xf32>
    %cst_32 = arith.constant 1.000000e+00 : f32
    %72 = vector.broadcast %cst_32 : f32 to vector<2x32xf32>
    %73 = arith.subf %72, %65 : vector<2x32xf32>
    %74 = arith.mulf %73, %71 : vector<2x32xf32>
    %75 = arith.mulf %65, %13 : vector<2x32xf32>
    %76 = arith.addf %74, %75 : vector<2x32xf32>
    %77 = arith.index_cast %16 : i32 to index
    %c0_33 = arith.constant 0 : index
    %78 = vector.load %arg18[%77, %c0_33] : memref<8x32xf32, #tpu.memory_space<vmem>>, vector<2x32xf32>
    tpu.vector_store %arg18[%77, %c0_33], %76 {strides = array<i32>} : memref<8x32xf32, #tpu.memory_space<vmem>>, vector<2x32xf32>,
    %79 = arith.truncf %76 : vector<2x32xf32> to vector<2x32xbf16>
    %c1_i32 = arith.constant 1 : i32
    %c2_i32_34 = arith.constant 2 : i32
    %80 = arith.muli %c1_i32, %c2_i32_34 : i32
    %81 = tpu.assume_multiple %80, 2 : i32
    %82 = arith.index_cast %81 : i32 to index
    %c0_35 = arith.constant 0 : index
    %83 = vector.load %arg16[%82, %c0_35] : memref<8x40xf32, #tpu.memory_space<vmem>>, vector<2x40xf32>
    %84 = vector.extract_strided_slice %83 {offsets = [0, 0], sizes = [2, 8], strides = [1, 1]} : vector<2x40xf32> to vector<2x8xf32>
    %85 = vector.extract_strided_slice %83 {offsets = [0, 8], sizes = [2, 32], strides = [1, 1]} : vector<2x40xf32> to vector<2x32xf32>
    %cst_36 = arith.constant dense<0.000000e+00> : vector<2x104xf32>
    %86 = tpu.matmul %79, %8, %cst_36 {dimension_numbers = #tpu.dot_dimension_numbers<[1], [0], [0], [1], [0, 0, 1, 1], [], []>} : vector<2x32xbf16>, vector<32x104xbf16>, vector<2x104xf32> -> vector<2x104xf32>
    %87 = vector.extract_strided_slice %86 {offsets = [0, 0], sizes = [2, 8], strides = [1, 1]} : vector<2x104xf32> to vector<2x8xf32>
    %88 = vector.extract_strided_slice %86 {offsets = [0, 8], sizes = [2, 32], strides = [1, 1]} : vector<2x104xf32> to vector<2x32xf32>
    %89 = vector.extract_strided_slice %86 {offsets = [0, 40], sizes = [2, 32], strides = [1, 1]} : vector<2x104xf32> to vector<2x32xf32>
    %90 = vector.extract_strided_slice %86 {offsets = [0, 72], sizes = [2, 32], strides = [1, 1]} : vector<2x104xf32> to vector<2x32xf32>
    %91 = arith.addf %84, %87 : vector<2x8xf32>
    %cst_37 = arith.constant dense<0xFF800000> : vector<2xf32>
    %92 = vector.multi_reduction <maximumf>, %91, %cst_37 [1] : vector<2x8xf32> to vector<2xf32>
    %93 = vector.shape_cast %92 : vector<2xf32> to vector<2x1xf32>
    %94 = vector.broadcast %93 : vector<2x1xf32> to vector<2x8xf32>
    %95 = arith.subf %91, %94 : vector<2x8xf32>
    %96 = math.exp %95 : vector<2x8xf32>
    %cst_38 = arith.constant dense<0.000000e+00> : vector<2xf32>
    %97 = vector.multi_reduction <add>, %96, %cst_38 [1] : vector<2x8xf32> to vector<2xf32>
    %98 = vector.shape_cast %97 : vector<2xf32> to vector<2x1xf32>
    %99 = tpu.reciprocal %98 {approx = true} : vector<2x1xf32> -> vector<2x1xf32>
    %100 = vector.broadcast %99 : vector<2x1xf32> to vector<2x8xf32>
    %101 = arith.mulf %96, %100 : vector<2x8xf32>
    %102 = arith.index_cast %81 : i32 to index
    %c0_39 = arith.constant 0 : index
    %103 = vector.load %arg17[%102, %c0_39] : memref<8x8xf32, #tpu.memory_space<vmem>>, vector<2x8xf32>
    tpu.vector_store %arg17[%102, %c0_39], %101 {strides = array<i32>} : memref<8x8xf32, #tpu.memory_space<vmem>>, vector<2x8xf32>,
    %104 = arith.truncf %101 : vector<2x8xf32> to vector<2x8xbf16>
    %105 = vector.shape_cast %104 : vector<2x8xbf16> to vector<2x1x8xbf16>
    "tpu.trace_start"() <{level = 10 : i32, message = "bql,blh->bqh"}> : () -> ()
    %cst_40 = arith.constant dense<0.000000e+00> : vector<2x1x32xf32>
    %106 = tpu.matmul %105, %7, %cst_40 {dimension_numbers = #tpu.dot_dimension_numbers<[2], [1], [1], [2], [0, 0, 0, 1, 1, 2], [0], [0]>} : vector<2x1x8xbf16>, vector<2x8x32xbf16>, vector<2x1x32xf32> -> vector<2x1x32xf32>
    "tpu.trace_stop"() : () -> ()
    %107 = vector.shape_cast %106 : vector<2x1x32xf32> to vector<2x32xf32>
    %108 = arith.truncf %107 : vector<2x32xf32> to vector<2x32xbf16>
    %cst_41 = arith.constant dense<0.000000e+00> : vector<2x32xf32>
    %109 = tpu.matmul %108, %9, %cst_41 {dimension_numbers = #tpu.dot_dimension_numbers<[1], [0], [0], [1], [0, 0, 1, 1], [], []>} : vector<2x32xbf16>, vector<32x32xbf16>, vector<2x32xf32> -> vector<2x32xf32>
    %110 = arith.addf %85, %109 : vector<2x32xf32>
    %cst_42 = arith.constant 0.000000e+00 : f32
    %111 = vector.broadcast %cst_42 : f32 to vector<2x32xf32>
    %112 = arith.maximumf %110, %111 : vector<2x32xf32>
    %113 = arith.truncf %112 : vector<2x32xf32> to vector<2x32xbf16>
    %cst_43 = arith.constant dense<0.000000e+00> : vector<2x96xf32>
    %114 = tpu.matmul %113, %10, %cst_43 {dimension_numbers = #tpu.dot_dimension_numbers<[1], [0], [0], [1], [0, 0, 1, 1], [], []>} : vector<2x32xbf16>, vector<32x96xbf16>, vector<2x96xf32> -> vector<2x96xf32>
    %115 = vector.broadcast %11 : vector<1x96xf32> to vector<2x96xf32>
    %116 = arith.addf %114, %115 : vector<2x96xf32>
    %117 = vector.extract_strided_slice %116 {offsets = [0, 0], sizes = [2, 32], strides = [1, 1]} : vector<2x96xf32> to vector<2x32xf32>
    %118 = arith.addf %117, %88 : vector<2x32xf32>
    %119 = arith.negf %118 : vector<2x32xf32>
    %120 = math.exp %119 : vector<2x32xf32>
    %cst_44 = arith.constant 1.000000e+00 : f32
    %121 = vector.broadcast %cst_44 : f32 to vector<2x32xf32>
    %122 = arith.addf %121, %120 : vector<2x32xf32>
    %123 = arith.divf %121, %122 : vector<2x32xf32>
    %124 = vector.extract_strided_slice %116 {offsets = [0, 32], sizes = [2, 32], strides = [1, 1]} : vector<2x96xf32> to vector<2x32xf32>
    %125 = arith.addf %124, %89 : vector<2x32xf32>
    %126 = arith.negf %125 : vector<2x32xf32>
    %127 = math.exp %126 : vector<2x32xf32>
    %cst_45 = arith.constant 1.000000e+00 : f32
    %128 = vector.broadcast %cst_45 : f32 to vector<2x32xf32>
    %129 = arith.addf %128, %127 : vector<2x32xf32>
    %130 = arith.divf %128, %129 : vector<2x32xf32>
    %131 = vector.extract_strided_slice %116 {offsets = [0, 64], sizes = [2, 32], strides = [1, 1]} : vector<2x96xf32> to vector<2x32xf32>
    %132 = vector.broadcast %12 : vector<1x32xf32> to vector<2x32xf32>
    %133 = arith.addf %90, %132 : vector<2x32xf32>
    %134 = arith.mulf %123, %133 : vector<2x32xf32>
    %135 = arith.addf %131, %134 : vector<2x32xf32>
    %136 = math.tanh %135 : vector<2x32xf32>
    %cst_46 = arith.constant 1.000000e+00 : f32
    %137 = vector.broadcast %cst_46 : f32 to vector<2x32xf32>
    %138 = arith.subf %137, %130 : vector<2x32xf32>
    %139 = arith.mulf %138, %136 : vector<2x32xf32>
    %140 = arith.mulf %130, %76 : vector<2x32xf32>
    %141 = arith.addf %139, %140 : vector<2x32xf32>
    %142 = arith.index_cast %81 : i32 to index
    %c0_47 = arith.constant 0 : index
    %143 = vector.load %arg18[%142, %c0_47] : memref<8x32xf32, #tpu.memory_space<vmem>>, vector<2x32xf32>
    tpu.vector_store %arg18[%142, %c0_47], %141 {strides = array<i32>} : memref<8x32xf32, #tpu.memory_space<vmem>>, vector<2x32xf32>,
    %144 = arith.truncf %141 : vector<2x32xf32> to vector<2x32xbf16>
    %c2_i32_48 = arith.constant 2 : i32
    %c2_i32_49 = arith.constant 2 : i32
    %145 = arith.muli %c2_i32_48, %c2_i32_49 : i32
    %146 = tpu.assume_multiple %145, 2 : i32
    %147 = arith.index_cast %146 : i32 to index
    %c0_50 = arith.constant 0 : index
    %148 = vector.load %arg16[%147, %c0_50] : memref<8x40xf32, #tpu.memory_space<vmem>>, vector<2x40xf32>
    %149 = vector.extract_strided_slice %148 {offsets = [0, 0], sizes = [2, 8], strides = [1, 1]} : vector<2x40xf32> to vector<2x8xf32>
    %150 = vector.extract_strided_slice %148 {offsets = [0, 8], sizes = [2, 32], strides = [1, 1]} : vector<2x40xf32> to vector<2x32xf32>
    %cst_51 = arith.constant dense<0.000000e+00> : vector<2x104xf32>
    %151 = tpu.matmul %144, %8, %cst_51 {dimension_numbers = #tpu.dot_dimension_numbers<[1], [0], [0], [1], [0, 0, 1, 1], [], []>} : vector<2x32xbf16>, vector<32x104xbf16>, vector<2x104xf32> -> vector<2x104xf32>
    %152 = vector.extract_strided_slice %151 {offsets = [0, 0], sizes = [2, 8], strides = [1, 1]} : vector<2x104xf32> to vector<2x8xf32>
    %153 = vector.extract_strided_slice %151 {offsets = [0, 8], sizes = [2, 32], strides = [1, 1]} : vector<2x104xf32> to vector<2x32xf32>
    %154 = vector.extract_strided_slice %151 {offsets = [0, 40], sizes = [2, 32], strides = [1, 1]} : vector<2x104xf32> to vector<2x32xf32>
    %155 = vector.extract_strided_slice %151 {offsets = [0, 72], sizes = [2, 32], strides = [1, 1]} : vector<2x104xf32> to vector<2x32xf32>
    %156 = arith.addf %149, %152 : vector<2x8xf32>
    %cst_52 = arith.constant dense<0xFF800000> : vector<2xf32>
    %157 = vector.multi_reduction <maximumf>, %156, %cst_52 [1] : vector<2x8xf32> to vector<2xf32>
    %158 = vector.shape_cast %157 : vector<2xf32> to vector<2x1xf32>
    %159 = vector.broadcast %158 : vector<2x1xf32> to vector<2x8xf32>
    %160 = arith.subf %156, %159 : vector<2x8xf32>
    %161 = math.exp %160 : vector<2x8xf32>
    %cst_53 = arith.constant dense<0.000000e+00> : vector<2xf32>
    %162 = vector.multi_reduction <add>, %161, %cst_53 [1] : vector<2x8xf32> to vector<2xf32>
    %163 = vector.shape_cast %162 : vector<2xf32> to vector<2x1xf32>
    %164 = tpu.reciprocal %163 {approx = true} : vector<2x1xf32> -> vector<2x1xf32>
    %165 = vector.broadcast %164 : vector<2x1xf32> to vector<2x8xf32>
    %166 = arith.mulf %161, %165 : vector<2x8xf32>
    %167 = arith.index_cast %146 : i32 to index
    %c0_54 = arith.constant 0 : index
    %168 = vector.load %arg17[%167, %c0_54] : memref<8x8xf32, #tpu.memory_space<vmem>>, vector<2x8xf32>
    tpu.vector_store %arg17[%167, %c0_54], %166 {strides = array<i32>} : memref<8x8xf32, #tpu.memory_space<vmem>>, vector<2x8xf32>,
    %169 = arith.truncf %166 : vector<2x8xf32> to vector<2x8xbf16>
    %170 = vector.shape_cast %169 : vector<2x8xbf16> to vector<2x1x8xbf16>
    "tpu.trace_start"() <{level = 10 : i32, message = "bql,blh->bqh"}> : () -> ()
    %cst_55 = arith.constant dense<0.000000e+00> : vector<2x1x32xf32>
    %171 = tpu.matmul %170, %7, %cst_55 {dimension_numbers = #tpu.dot_dimension_numbers<[2], [1], [1], [2], [0, 0, 0, 1, 1, 2], [0], [0]>} : vector<2x1x8xbf16>, vector<2x8x32xbf16>, vector<2x1x32xf32> -> vector<2x1x32xf32>
    "tpu.trace_stop"() : () -> ()
    %172 = vector.shape_cast %171 : vector<2x1x32xf32> to vector<2x32xf32>
    %173 = arith.truncf %172 : vector<2x32xf32> to vector<2x32xbf16>
    %cst_56 = arith.constant dense<0.000000e+00> : vector<2x32xf32>
    %174 = tpu.matmul %173, %9, %cst_56 {dimension_numbers = #tpu.dot_dimension_numbers<[1], [0], [0], [1], [0, 0, 1, 1], [], []>} : vector<2x32xbf16>, vector<32x32xbf16>, vector<2x32xf32> -> vector<2x32xf32>
    %175 = arith.addf %150, %174 : vector<2x32xf32>
    %cst_57 = arith.constant 0.000000e+00 : f32
    %176 = vector.broadcast %cst_57 : f32 to vector<2x32xf32>
    %177 = arith.maximumf %175, %176 : vector<2x32xf32>
    %178 = arith.truncf %177 : vector<2x32xf32> to vector<2x32xbf16>
    %cst_58 = arith.constant dense<0.000000e+00> : vector<2x96xf32>
    %179 = tpu.matmul %178, %10, %cst_58 {dimension_numbers = #tpu.dot_dimension_numbers<[1], [0], [0], [1], [0, 0, 1, 1], [], []>} : vector<2x32xbf16>, vector<32x96xbf16>, vector<2x96xf32> -> vector<2x96xf32>
    %180 = vector.broadcast %11 : vector<1x96xf32> to vector<2x96xf32>
    %181 = arith.addf %179, %180 : vector<2x96xf32>
    %182 = vector.extract_strided_slice %181 {offsets = [0, 0], sizes = [2, 32], strides = [1, 1]} : vector<2x96xf32> to vector<2x32xf32>
    %183 = arith.addf %182, %153 : vector<2x32xf32>
    %184 = arith.negf %183 : vector<2x32xf32>
    %185 = math.exp %184 : vector<2x32xf32>
    %cst_59 = arith.constant 1.000000e+00 : f32
    %186 = vector.broadcast %cst_59 : f32 to vector<2x32xf32>
    %187 = arith.addf %186, %185 : vector<2x32xf32>
    %188 = arith.divf %186, %187 : vector<2x32xf32>
    %189 = vector.extract_strided_slice %181 {offsets = [0, 32], sizes = [2, 32], strides = [1, 1]} : vector<2x96xf32> to vector<2x32xf32>
    %190 = arith.addf %189, %154 : vector<2x32xf32>
    %191 = arith.negf %190 : vector<2x32xf32>
    %192 = math.exp %191 : vector<2x32xf32>
    %cst_60 = arith.constant 1.000000e+00 : f32
    %193 = vector.broadcast %cst_60 : f32 to vector<2x32xf32>
    %194 = arith.addf %193, %192 : vector<2x32xf32>
    %195 = arith.divf %193, %194 : vector<2x32xf32>
    %196 = vector.extract_strided_slice %181 {offsets = [0, 64], sizes = [2, 32], strides = [1, 1]} : vector<2x96xf32> to vector<2x32xf32>
    %197 = vector.broadcast %12 : vector<1x32xf32> to vector<2x32xf32>
    %198 = arith.addf %155, %197 : vector<2x32xf32>
    %199 = arith.mulf %188, %198 : vector<2x32xf32>
    %200 = arith.addf %196, %199 : vector<2x32xf32>
    %201 = math.tanh %200 : vector<2x32xf32>
    %cst_61 = arith.constant 1.000000e+00 : f32
    %202 = vector.broadcast %cst_61 : f32 to vector<2x32xf32>
    %203 = arith.subf %202, %195 : vector<2x32xf32>
    %204 = arith.mulf %203, %201 : vector<2x32xf32>
    %205 = arith.mulf %195, %141 : vector<2x32xf32>
    %206 = arith.addf %204, %205 : vector<2x32xf32>
    %207 = arith.index_cast %146 : i32 to index
    %c0_62 = arith.constant 0 : index
    %208 = vector.load %arg18[%207, %c0_62] : memref<8x32xf32, #tpu.memory_space<vmem>>, vector<2x32xf32>
    tpu.vector_store %arg18[%207, %c0_62], %206 {strides = array<i32>} : memref<8x32xf32, #tpu.memory_space<vmem>>, vector<2x32xf32>,
    %209 = arith.truncf %206 : vector<2x32xf32> to vector<2x32xbf16>
    %c3_i32 = arith.constant 3 : i32
    %c2_i32_63 = arith.constant 2 : i32
    %210 = arith.muli %c3_i32, %c2_i32_63 : i32
    %211 = tpu.assume_multiple %210, 2 : i32
    %212 = arith.index_cast %211 : i32 to index
    %c0_64 = arith.constant 0 : index
    %213 = vector.load %arg16[%212, %c0_64] : memref<8x40xf32, #tpu.memory_space<vmem>>, vector<2x40xf32>
    %214 = vector.extract_strided_slice %213 {offsets = [0, 0], sizes = [2, 8], strides = [1, 1]} : vector<2x40xf32> to vector<2x8xf32>
    %215 = vector.extract_strided_slice %213 {offsets = [0, 8], sizes = [2, 32], strides = [1, 1]} : vector<2x40xf32> to vector<2x32xf32>
    %cst_65 = arith.constant dense<0.000000e+00> : vector<2x104xf32>
    %216 = tpu.matmul %209, %8, %cst_65 {dimension_numbers = #tpu.dot_dimension_numbers<[1], [0], [0], [1], [0, 0, 1, 1], [], []>} : vector<2x32xbf16>, vector<32x104xbf16>, vector<2x104xf32> -> vector<2x104xf32>
    %217 = vector.extract_strided_slice %216 {offsets = [0, 0], sizes = [2, 8], strides = [1, 1]} : vector<2x104xf32> to vector<2x8xf32>
    %218 = vector.extract_strided_slice %216 {offsets = [0, 8], sizes = [2, 32], strides = [1, 1]} : vector<2x104xf32> to vector<2x32xf32>
    %219 = vector.extract_strided_slice %216 {offsets = [0, 40], sizes = [2, 32], strides = [1, 1]} : vector<2x104xf32> to vector<2x32xf32>
    %220 = vector.extract_strided_slice %216 {offsets = [0, 72], sizes = [2, 32], strides = [1, 1]} : vector<2x104xf32> to vector<2x32xf32>
    %221 = arith.addf %214, %217 : vector<2x8xf32>
    %cst_66 = arith.constant dense<0xFF800000> : vector<2xf32>
    %222 = vector.multi_reduction <maximumf>, %221, %cst_66 [1] : vector<2x8xf32> to vector<2xf32>
    %223 = vector.shape_cast %222 : vector<2xf32> to vector<2x1xf32>
    %224 = vector.broadcast %223 : vector<2x1xf32> to vector<2x8xf32>
    %225 = arith.subf %221, %224 : vector<2x8xf32>
    %226 = math.exp %225 : vector<2x8xf32>
    %cst_67 = arith.constant dense<0.000000e+00> : vector<2xf32>
    %227 = vector.multi_reduction <add>, %226, %cst_67 [1] : vector<2x8xf32> to vector<2xf32>
    %228 = vector.shape_cast %227 : vector<2xf32> to vector<2x1xf32>
    %229 = tpu.reciprocal %228 {approx = true} : vector<2x1xf32> -> vector<2x1xf32>
    %230 = vector.broadcast %229 : vector<2x1xf32> to vector<2x8xf32>
    %231 = arith.mulf %226, %230 : vector<2x8xf32>
    %232 = arith.index_cast %211 : i32 to index
    %c0_68 = arith.constant 0 : index
    %233 = vector.load %arg17[%232, %c0_68] : memref<8x8xf32, #tpu.memory_space<vmem>>, vector<2x8xf32>
    tpu.vector_store %arg17[%232, %c0_68], %231 {strides = array<i32>} : memref<8x8xf32, #tpu.memory_space<vmem>>, vector<2x8xf32>,
    %234 = arith.truncf %231 : vector<2x8xf32> to vector<2x8xbf16>
    %235 = vector.shape_cast %234 : vector<2x8xbf16> to vector<2x1x8xbf16>
    "tpu.trace_start"() <{level = 10 : i32, message = "bql,blh->bqh"}> : () -> ()
    %cst_69 = arith.constant dense<0.000000e+00> : vector<2x1x32xf32>
    %236 = tpu.matmul %235, %7, %cst_69 {dimension_numbers = #tpu.dot_dimension_numbers<[2], [1], [1], [2], [0, 0, 0, 1, 1, 2], [0], [0]>} : vector<2x1x8xbf16>, vector<2x8x32xbf16>, vector<2x1x32xf32> -> vector<2x1x32xf32>
    "tpu.trace_stop"() : () -> ()
    %237 = vector.shape_cast %236 : vector<2x1x32xf32> to vector<2x32xf32>
    %238 = arith.truncf %237 : vector<2x32xf32> to vector<2x32xbf16>
    %cst_70 = arith.constant dense<0.000000e+00> : vector<2x32xf32>
    %239 = tpu.matmul %238, %9, %cst_70 {dimension_numbers = #tpu.dot_dimension_numbers<[1], [0], [0], [1], [0, 0, 1, 1], [], []>} : vector<2x32xbf16>, vector<32x32xbf16>, vector<2x32xf32> -> vector<2x32xf32>
    %240 = arith.addf %215, %239 : vector<2x32xf32>
    %cst_71 = arith.constant 0.000000e+00 : f32
    %241 = vector.broadcast %cst_71 : f32 to vector<2x32xf32>
    %242 = arith.maximumf %240, %241 : vector<2x32xf32>
    %243 = arith.truncf %242 : vector<2x32xf32> to vector<2x32xbf16>
    %cst_72 = arith.constant dense<0.000000e+00> : vector<2x96xf32>
    %244 = tpu.matmul %243, %10, %cst_72 {dimension_numbers = #tpu.dot_dimension_numbers<[1], [0], [0], [1], [0, 0, 1, 1], [], []>} : vector<2x32xbf16>, vector<32x96xbf16>, vector<2x96xf32> -> vector<2x96xf32>
    %245 = vector.broadcast %11 : vector<1x96xf32> to vector<2x96xf32>
    %246 = arith.addf %244, %245 : vector<2x96xf32>
    %247 = vector.extract_strided_slice %246 {offsets = [0, 0], sizes = [2, 32], strides = [1, 1]} : vector<2x96xf32> to vector<2x32xf32>
    %248 = arith.addf %247, %218 : vector<2x32xf32>
    %249 = arith.negf %248 : vector<2x32xf32>
    %250 = math.exp %249 : vector<2x32xf32>
    %cst_73 = arith.constant 1.000000e+00 : f32
    %251 = vector.broadcast %cst_73 : f32 to vector<2x32xf32>
    %252 = arith.addf %251, %250 : vector<2x32xf32>
    %253 = arith.divf %251, %252 : vector<2x32xf32>
    %254 = vector.extract_strided_slice %246 {offsets = [0, 32], sizes = [2, 32], strides = [1, 1]} : vector<2x96xf32> to vector<2x32xf32>
    %255 = arith.addf %254, %219 : vector<2x32xf32>
    %256 = arith.negf %255 : vector<2x32xf32>
    %257 = math.exp %256 : vector<2x32xf32>
    %cst_74 = arith.constant 1.000000e+00 : f32
    %258 = vector.broadcast %cst_74 : f32 to vector<2x32xf32>
    %259 = arith.addf %258, %257 : vector<2x32xf32>
    %260 = arith.divf %258, %259 : vector<2x32xf32>
    %261 = vector.extract_strided_slice %246 {offsets = [0, 64], sizes = [2, 32], strides = [1, 1]} : vector<2x96xf32> to vector<2x32xf32>
    %262 = vector.broadcast %12 : vector<1x32xf32> to vector<2x32xf32>
    %263 = arith.addf %220, %262 : vector<2x32xf32>
    %264 = arith.mulf %253, %263 : vector<2x32xf32>
    %265 = arith.addf %261, %264 : vector<2x32xf32>
    %266 = math.tanh %265 : vector<2x32xf32>
    %cst_75 = arith.constant 1.000000e+00 : f32
    %267 = vector.broadcast %cst_75 : f32 to vector<2x32xf32>
    %268 = arith.subf %267, %260 : vector<2x32xf32>
    %269 = arith.mulf %268, %266 : vector<2x32xf32>
    %270 = arith.mulf %260, %206 : vector<2x32xf32>
    %271 = arith.addf %269, %270 : vector<2x32xf32>
    %272 = arith.index_cast %211 : i32 to index
    %c0_76 = arith.constant 0 : index
    %273 = vector.load %arg18[%272, %c0_76] : memref<8x32xf32, #tpu.memory_space<vmem>>, vector<2x32xf32>
    tpu.vector_store %arg18[%272, %c0_76], %271 {strides = array<i32>} : memref<8x32xf32, #tpu.memory_space<vmem>>, vector<2x32xf32>,
    %274 = arith.truncf %271 : vector<2x32xf32> to vector<2x32xbf16>
    %c4_i32 = arith.constant 4 : i32
    %c0_77 = arith.constant 0 : index
    %c0_78 = arith.constant 0 : index
    %275 = vector.load %arg18[%c0_77, %c0_78] : memref<8x32xf32, #tpu.memory_space<vmem>>, vector<8x32xf32>
    %276 = arith.truncf %275 : vector<8x32xf32> to vector<8x32xbf16>
    %c0_79 = arith.constant 0 : index
    %c0_80 = arith.constant 0 : index
    %277 = vector.load %arg10[%c0_79, %c0_80] : memref<32x16xbf16, #tpu.memory_space<vmem>>, vector<32x16xbf16>
    %cst_81 = arith.constant dense<0.000000e+00> : vector<8x16xf32>
    %278 = tpu.matmul %276, %277, %cst_81 {dimension_numbers = #tpu.dot_dimension_numbers<[1], [0], [0], [1], [0, 0, 1, 1], [], []>} : vector<8x32xbf16>, vector<32x16xbf16>, vector<8x16xf32> -> vector<8x16xf32>
    %c0_82 = arith.constant 0 : index
    %c0_83 = arith.constant 0 : index
    %279 = vector.load %arg11[%c0_82, %c0_83] : memref<1x16xf32, #tpu.memory_space<vmem>>, vector<1x16xf32>
    %280 = vector.broadcast %279 : vector<1x16xf32> to vector<8x16xf32>
    %281 = arith.addf %278, %280 : vector<8x16xf32>
    %cst_84 = arith.constant dense<0xFF800000> : vector<8xf32>
    %282 = vector.multi_reduction <maximumf>, %281, %cst_84 [1] : vector<8x16xf32> to vector<8xf32>
    %283 = vector.shape_cast %282 : vector<8xf32> to vector<8x1xf32>
    %284 = vector.broadcast %283 : vector<8x1xf32> to vector<8x16xf32>
    %285 = arith.subf %281, %284 : vector<8x16xf32>
    %286 = math.exp %285 : vector<8x16xf32>
    %cst_85 = arith.constant dense<0.000000e+00> : vector<8xf32>
    %287 = vector.multi_reduction <add>, %286, %cst_85 [1] : vector<8x16xf32> to vector<8xf32>
    %288 = vector.shape_cast %287 : vector<8xf32> to vector<8x1xf32>
    %289 = math.log %288 : vector<8x1xf32>
    %c0_86 = arith.constant 0 : index
    %c0_87 = arith.constant 0 : index
    %290 = vector.load %arg1[%c0_86, %c0_87] : memref<8x1xi32, #tpu.memory_space<vmem>>, vector<8x1xi32>
    %291 = tpu.iota {dimensions = array<i32: 1>} : vector<8x16xi32>
    %292 = vector.broadcast %290 : vector<8x1xi32> to vector<8x16xi32>
    %293 = arith.cmpi eq, %291, %292 : vector<8x16xi32>
    %cst_88 = arith.constant 0.000000e+00 : f32
    %294 = vector.broadcast %cst_88 : f32 to vector<8x16xf32>
    %295 = arith.select %293, %281, %294 : vector<8x16xi1>, vector<8x16xf32>
    %cst_89 = arith.constant dense<0.000000e+00> : vector<8xf32>
    %296 = vector.multi_reduction <add>, %295, %cst_89 [1] : vector<8x16xf32> to vector<8xf32>
    %297 = vector.shape_cast %296 : vector<8xf32> to vector<8x1xf32>
    %298 = arith.addf %283, %289 : vector<8x1xf32>
    %299 = arith.subf %298, %297 : vector<8x1xf32>
    %c0_i32_90 = arith.constant 0 : i32
    %300 = vector.broadcast %c0_i32_90 : i32 to vector<8x1xi32>
    %301 = arith.cmpi ne, %290, %300 : vector<8x1xi32>
    %302 = arith.extui %301 : vector<8x1xi1> to vector<8x1xi32>
    %303 = arith.sitofp %302 : vector<8x1xi32> to vector<8x1xf32>
    %c0_91 = arith.constant 0 : index
    %c0_92 = arith.constant 0 : index
    %304 = vector.load %arg12[%c0_91, %c0_92] : memref<4x8xf32, #tpu.memory_space<vmem>>, vector<4x8xf32>
    %305 = arith.mulf %299, %303 : vector<8x1xf32>
    %cst_93 = arith.constant dense<0.000000e+00> : vector<4x1xf32>
    %306 = tpu.matmul %304, %305, %cst_93 {dimension_numbers = #tpu.dot_dimension_numbers<[1], [0], [0], [1], [0, 0, 1, 1], [], []>} : vector<4x8xf32>, vector<8x1xf32>, vector<4x1xf32> -> vector<4x1xf32>
    %c0_94 = arith.constant 0 : index
    %c0_95 = arith.constant 0 : index
    %307 = vector.load %arg12[%c0_94, %c0_95] : memref<4x8xf32, #tpu.memory_space<vmem>>, vector<4x8xf32>
    %cst_96 = arith.constant dense<0.000000e+00> : vector<4x1xf32>
    %308 = tpu.matmul %307, %303, %cst_96 {dimension_numbers = #tpu.dot_dimension_numbers<[1], [0], [0], [1], [0, 0, 1, 1], [], []>} : vector<4x8xf32>, vector<8x1xf32>, vector<4x1xf32> -> vector<4x1xf32>
    %309 = arith.divf %306, %308 : vector<4x1xf32>
    %310 = vector.shape_cast %309 : vector<4x1xf32> to vector<1x4x1xf32>
    %cst_97 = arith.constant dense<0.000000e+00> : vector<1xf32>
    %311 = vector.multi_reduction <add>, %310, %cst_97 [1, 2] : vector<1x4x1xf32> to vector<1xf32>
    %312 = vector.shape_cast %311 : vector<1xf32> to vector<1x1x1xf32>
    %313 = vector.extract %312[0, 0, 0] : f32 from vector<1x1x1xf32>
    %314 = vector.broadcast %313 : f32 to vector<1x1xf32>
    %c0_98 = arith.constant 0 : index
    %c0_99 = arith.constant 0 : index
    %315 = vector.load %arg15[%c0_98, %c0_99] : memref<1x1xf32, #tpu.memory_space<vmem>>, vector<1x1xf32>
    tpu.vector_store %arg15[%c0_98, %c0_99], %314 {strides = array<i32>} : memref<1x1xf32, #tpu.memory_space<vmem>>, vector<1x1xf32>,
    %c0_100 = arith.constant 0 : index
    %c0_101 = arith.constant 0 : index
    %316 = vector.load %arg13[%c0_100, %c0_101] : memref<3x8xf32, #tpu.memory_space<vmem>>, vector<3x8xf32>
    %c0_102 = arith.constant 0 : index
    %c0_103 = arith.constant 0 : index
    %317 = vector.load %arg17[%c0_102, %c0_103] : memref<8x8xf32, #tpu.memory_space<vmem>>, vector<8x8xf32>
    %cst_104 = arith.constant dense<0.000000e+00> : vector<3x8xf32>
    %318 = tpu.matmul %316, %317, %cst_104 {dimension_numbers = #tpu.dot_dimension_numbers<[1], [0], [0], [1], [0, 0, 1, 1], [], []>} : vector<3x8xf32>, vector<8x8xf32>, vector<3x8xf32> -> vector<3x8xf32>
    %c0_105 = arith.constant 0 : index
    %c0_106 = arith.constant 0 : index
    %319 = vector.load %arg14[%c0_105, %c0_106] : memref<3x8xf32, #tpu.memory_space<vmem>>, vector<3x8xf32>
    tpu.vector_store %arg14[%c0_105, %c0_106], %318 {strides = array<i32>} : memref<3x8xf32, #tpu.memory_space<vmem>>, vector<3x8xf32>,
    return
  }
}

</mosaic_0001>

<bundles_post_ra>
// kernel: tpu_custom_call.1
= control target key start
LH: loop header
LB: loop body
LE: loop exit
PB: predicated region body
PF: predicated region fallthrough
CT: control target
= control target key end

     0   :  { %s2912_s0 = inlined_call_operand.hbm [shape: bf16[8,32], index: 0, kind: input, shape index: {}]   ;;  %s2913_s1 = inlined_call_operand.vmem [shape: s32[8,1], index: 1, kind: input, shape index: {}]   ;;  %s2914_s2 = inlined_call_operand.hbm [shape: bf16[2,8,32], index: 2, kind: input, shape index: {}]   ;;  %s2915_s3 = inlined_call_operand.vmem [shape: bf16[32,40], index: 3, kind: input, shape index: {}]   ;;  %s2916_s4 = inlined_call_operand.hbm [shape: f32[1,40], index: 4, kind: input, shape index: {}]   ;;  %s2917_s5 = inlined_call_operand.vmem [shape: bf16[32,104], index: 5, kind: input, shape index: {}]   ;;  %s2918_s6 = inlined_call_operand.vmem [shape: bf16[32,32], index: 6, kind: input, shape index: {}]   ;;  %s2919_s7 = inlined_call_operand.hbm [shape: bf16[32,96], index: 7, kind: input, shape index: {}]   ;;  %s2920_s8 = inlined_call_operand.vmem [shape: f32[1,96], index: 8, kind: input, shape index: {}]   ;;  %s2921_s9 = inlined_call_operand.vmem [shape: f32[1,32], index: 9, kind: input, shape index: {}]   ;;  %s2922_s10 = inlined_call_operand.vmem [shape: bf16[32,16], index: 10, kind: input, shape index: {}]   ;;  %s2923_s11 = inlined_call_operand.vmem [shape: f32[1,16], index: 11, kind: input, shape index: {}]   ;;  %s2924_s12 = inlined_call_operand.vmem [shape: f32[4,8], index: 12, kind: input, shape index: {}]   ;;  %s2925_s13 = inlined_call_operand.vmem [shape: f32[3,8], index: 13, kind: input, shape index: {}]   ;;  %s2926_s14 = inlined_call_operand.hbm [shape: f32[3,8], index: 14, kind: output, shape index: {0}]   ;;  %s2927_s15 = inlined_call_operand.hbm [shape: f32[1,1], index: 15, kind: output, shape index: {1}]  }
   0x1   :  { %2929 = sst [smem:[#allocation21_spill]] %s2927_s15 }
   0x2   :  { %21 = vsyncpa [#allocation6], 0 }
   0x3   :  { %22 = vsyncpa [#allocation9], 0 }
   0x4   :  { %23 = vsyncpa [#allocation12], 0 }
   0x5   :  { %24 = vsyncpa [#allocation7], 0 }
   0x6   :  { %25 = vsyncpa [#allocation15], 0  ;;  %s2390_s18 = smov [#allocation8]   ;;  %s2248_s22 = scalar_lea.hbm %s2914_s2, 128 }
   0x7   :  { %s43_s19 = sshll.u32 %s2390_s18, 4  ;;  %p2249_p0 = scmp.ne.s32.totalorder %s2914_s2, %s2248_s22  ;;  %s44_s19 = int_to_ptr.vmem [resolvable:$true] %s43_s19 }
   0x8   :  { %p2252_p1 = scmp.lt.u32.totalorder %s2248_s22, %s2914_s2 }
   0xa   :  { %p2254_p2 = pnand %p2252_p1, %p2249_p0 }
   0xc   :  { %2257 = shalt.err (!%p2254_p2)
}
   0xd   :  { %s2258_s27 = scalar_lea.vmem %s44_s19, 128  ;;  %p2263_p4 = scmp.lt.s32.totalorder %s44_s19, %s44_s19 }
   0xe   :  { %p2259_p3 = scmp.ne.s32.totalorder %s44_s19, %s2258_s27  ;;  %p2264_p5 = scmp.lt.s32.totalorder %s2258_s27, %s2258_s27 }
  0x10   :  { %p2265_p6 = por %p2264_p5, %p2263_p4 }
  0x12   :  { %p2266_p7 = pnand %p2265_p6, %p2259_p3 }
  0x14   :  { %2269 = shalt.err (!%p2266_p7)
}
  0x15   :  { %s2391_s28 = smov 64   ;;  %s2392_s29 = smov 4  }
  0x16   :  { %49 = dma.hbm_to_vmem [thread:$0]  %s2914_s2, 128, %s44_s19, [#allocation9], %s2391_s28, %s2391_s28, %s2392_s29  }
  0x17   :  { %s2393_s17 = smov [#allocation5]   ;;  %s2394_s20 = smov [#allocation10]  }
  0x18   :  { %s32_s18 = sshll.u32 %s2393_s17, 4  ;;  %s58_s21 = sshll.u32 %s2394_s20, 4  ;;  %s33_s18 = int_to_ptr.vmem [resolvable:$true] %s32_s18  ;;  %s59_s21 = int_to_ptr.vmem [resolvable:$true] %s58_s21 }
  0x19   :  { %s2270_s24 = scalar_lea.hbm %s2912_s0, 64 }
  0x1a   :  { %p2271_p8 = scmp.ne.s32.totalorder %s2912_s0, %s2270_s24  ;;  %p2274_p9 = scmp.lt.u32.totalorder %s2270_s24, %s2912_s0 }
  0x1c   :  { %p2276_p10 = pnand %p2274_p9, %p2271_p8 }
  0x1e   :  { %2279 = shalt.err (!%p2276_p10)
}
  0x1f   :  { %s2280_s2 = scalar_lea.vmem %s33_s18, 64  ;;  %p2285_p12 = scmp.lt.s32.totalorder %s33_s18, %s33_s18 }
  0x20   :  { %p2281_p11 = scmp.ne.s32.totalorder %s33_s18, %s2280_s2  ;;  %p2286_p13 = scmp.lt.s32.totalorder %s2280_s2, %s2280_s2 }
  0x22   :  { %p2287_p0 = por %p2286_p13, %p2285_p12 }
  0x24   :  { %p2288_p1 = pnand %p2287_p0, %p2281_p11 }
  0x26   :  { %2291 = shalt.err (!%p2288_p1)
}
  0x27   :  { %35 = dma.hbm_to_vmem [thread:$0]  %s2912_s0, 64, %s33_s18, [#allocation6]  }
  0x28   :  { %s2292_s20 = scalar_lea.hbm %s2916_s4, 16 }
  0x29   :  { %p2293_p2 = scmp.ne.s32.totalorder %s2916_s4, %s2292_s20  ;;  %p2296_p3 = scmp.lt.u32.totalorder %s2292_s20, %s2916_s4 }
  0x2b   :  { %p2298_p4 = pnand %p2296_p3, %p2293_p2 }
  0x2d   :  { %2301 = shalt.err (!%p2298_p4)
}
  0x2e   :  { %s2302_s25 = scalar_lea.vmem %s59_s21, 16  ;;  %s2306_s26 = scalar_lea.vmem %s59_s21, 32 }
  0x2f   :  { %p2303_p5 = scmp.ne.s32.totalorder %s59_s21, %s2302_s25  ;;  %p2307_p6 = scmp.lt.s32.totalorder %s59_s21, %s59_s21 }
  0x30   :  { %p2308_p7 = scmp.lt.s32.totalorder %s2306_s26, %s2302_s25 }
  0x32   :  { %p2309_p8 = por %p2308_p7, %p2307_p6 }
  0x34   :  { %p2310_p9 = pnand %p2309_p8, %p2303_p5 }
  0x36   :  { %2313 = shalt.err (!%p2310_p9)
}
  0x37   :  { %61 = dma.hbm_to_vmem [thread:$0]  %s2916_s4, 16, %s59_s21, [#allocation9]  }
  0x38   :  { %s2395_s27 = smov [#allocation11]   ;;  %s2314_s16 = scalar_lea.hbm %s2919_s7, 256 }
  0x39   :  { %s71_s2 = sshll.u32 %s2395_s27, 4  ;;  %p2315_p10 = scmp.ne.s32.totalorder %s2919_s7, %s2314_s16  ;;  %s72_s2 = int_to_ptr.vmem [resolvable:$true] %s71_s2 }
  0x3a   :  { %p2318_p11 = scmp.lt.u32.totalorder %s2314_s16, %s2919_s7 }
  0x3c   :  { %p2320_p12 = pnand %p2318_p11, %p2315_p10 }
  0x3e   :  { %2323 = shalt.err (!%p2320_p12)
}
  0x3f   :  { %s2324_s23 = scalar_lea.vmem %s72_s2, 256  ;;  %p2329_p0 = scmp.lt.s32.totalorder %s72_s2, %s72_s2 }
  0x40   :  { %p2325_p13 = scmp.ne.s32.totalorder %s72_s2, %s2324_s23  ;;  %p2330_p1 = scmp.lt.s32.totalorder %s2324_s23, %s2324_s23 }
  0x42   :  { %p2331_p2 = por %p2330_p1, %p2329_p0 }
  0x44   :  { %p2332_p3 = pnand %p2331_p2, %p2325_p13 }
  0x46   :  { %2335 = shalt.err (!%p2332_p3)
}
  0x47   :  { %77 = dma.hbm_to_vmem [thread:$0]  %s2919_s7, 256, %s72_s2, [#allocation12], %s2391_s28, %s2391_s28, %s2392_s29  }
  0x48   :  { %2380 = dma.done.wait [#allocation6], 64  }
  0x49   :  { %2381 = vsyncadd [#allocation6], 4294967232 }
  0x4a   :  { %2382 = dma.done.wait [#allocation9], 144  }
  0x4b   :  { %2383 = vsyncadd [#allocation9], 4294967152 }
  0x4c   :  { %2384 = dma.done.wait [#allocation12], 256  }
  0x4d   :  { %2385 = vsyncadd [#allocation12], 4294967040  ;;  %v2396_v0 = vmov 0.0   ;;  %vm2397_vm0 = vmmov 0   ;;  %v2398_v1 = vmov 0   ;;  %v2192_v2 = vld [vmem:[%s2915_s3] sm:$0xff]   ;;  %v264_v33 = vlaneseq }
  0x4e   :  { %1996 = vmatprep.subr.bf16.mxu0 %v2396_v0  ;;  %2000 = vmatprep.mubr.msk.bf16.mxu0 %vm2397_vm0, %v2396_v0  ;;  %v2193_v3 = vld [vmem:[%s2915_s3 + $0x8] sm:$0xff]   ;;  %v2558_v4 = vld [vmem:[%s2917_s5] sm:$0xff]   ;;  %v103_v5 = vld [vmem:[#allocation5] sm:$0xf]  ;;  %vm127_vm1 = vcmask 261120   ;;  %vm171_vm2 = vcmask 326656  }
  0x4f   :  { %2004 = vmatprep.subr.bf16.mxu1 %v2396_v0  ;;  %2008 = vmatprep.mubr.msk.bf16.mxu1 %vm2397_vm0, %v2396_v0  ;;  %v2563_v6 = vld [vmem:[%s2917_s5 + $0x8] sm:$0xff]   ;;  %v1884_v7 = vld [vmem:[#allocation10] ss:$0 sm:$0xff]  ;;  %vm246_vm3 = vcmask 58368   ;;  %v1901_v25 = vld [vmem:[%s2921_s9] ss:$0 sm:$0xff] }
  0x50   :  { %2191 = vset.pattern.permute.xlu0 %v2398_v1  ;;  %1997 = vmatpush3.bf16.msra.mxu0 %v2192_v2  ;;  %s2399_s2 = smov 72   ;;  %v173_v26 = vld [vmem:[#allocation8] sm:$0xf]  ;;  %vm286_vm4 = vcmask 1043456   ;;  %v174_v27 = vld [vmem:[#allocation8 + $0x4] sm:$0xf] }
  0x51   :  { %1998 = vmatprep.subr.bf16.mxu0 %v2396_v0  ;;  %2005 = vmatpush3.bf16.msra.mxu1 %v2558_v4  ;;  %v2586_v28 = vsel %vm286_vm4, %v173_v26, 0  ;;  %v2588_v29 = vsel %vm286_vm4, %v174_v27, 0  ;;  %v2400_v31 = vmov 1966171168   ;;  %v265_v35 = vshrl.u32 %v264_v33, 7  ;;  %v2613_v48 = vld [vmem:[%s2918_s6] sm:$0xff]  }
  0x52   :  { %2006 = vmatprep.subr.bf16.mxu1 %v2396_v0  ;;  %v262_v32 = vunpack.c.l.s4 %v2400_v31  ;;  %vm282_vm5 = vcmask 64512   ;;  %v2620_v49 = vld [vmem:[%s2918_s6 + $0x8] sm:$0xff]   ;;  %vm388_vm6 = vcmask 1041409   ;;  %s2401_s6 = smov 8   ;;  %s2402_s17 = smov 120   ;;  %vm560_vm7 = vcmask 254976  }
  0x53   :  { %v2600_v42 = vsub.s32 0, %v265_v35  ;;  %s2403_s20 = smov 56   ;;  %vm1587_vm8 = vcmask 130048   ;;  %vm1762_vm11 = vcmask 3072   ;;  %vm1851_vm12 = vcmask 59392   ;;  %s2406_s26 = smov [#allocation13]  }
  0x54   :  { %1999 = vmatpush3.bf16.msra.mxu0 %v2193_v3  ;;  %v263_v34 = vunpack.c.0.s8 %v262_v32  ;;  %s1859_s0 = sshll.u32 %s2406_s26, 4  ;;  %s1860_s0 = int_to_ptr.vmem [resolvable:$true] %s1859_s0 }
  0x55   :  { %2012 = vmatprep.subr.bf16.mxu0 %v2396_v0  ;;  %2007 = vmatpush3.bf16.msra.mxu1 %v2563_v6  ;;  %s2336_s18 = scalar_lea.vmem %s1860_s0, 64  ;;  %p2341_p5 = scmp.lt.s32.totalorder %s1860_s0, %s1860_s0 }
  0x56   :  { %2018 = vmatprep.subr.bf16.mxu1 %v2396_v0  ;;  %v2595_v37 = vsub.s32 %v263_v34, %v265_v35  ;;  %p2337_p4 = scmp.ne.s32.totalorder %s1860_s0, %s2336_s18  ;;  %p2342_p6 = scmp.lt.s32.totalorder %s2336_s18, %s2336_s18 }
  0x57   :  { %2001 = vmatmul.mubr.msk.bf16.vlgmr.msra.gmra.mrb[0].mxu0 %vm127_vm1, %v103_v5 }
  0x58   :  { %2014 = vmatprep.mubr.msk.bf16.mxu0 %vm2397_vm0, %v2396_v0  ;;  %2009 = vmatmul.mubr.bf16.vlgmr.msra.gmra.mrb[0].mxu1 %v2398_v1  ;;  %p2343_p7 = por %p2342_p6, %p2341_p5 }
  0x59   :  { %2020 = vmatprep.mubr.msk.bf16.mxu1 %vm2397_vm0, %v2396_v0  ;;  %2013 = vmatpush3.bf16.msra.mxu0 %v2586_v28 }
  0x5a   :  { %2019 = vmatpush3.bf16.msra.mxu1 %v2588_v29  ;;  %2024 = vmatprep.subr.bf16.mxu0 %v2396_v0  ;;  %p2344_p8 = pnand %p2343_p7, %p2337_p4 }
  0x5b   :  { %2032 = vmatprep.subr.bf16.mxu1 %v2396_v0 }
 0x12a   :  { %v165_v8 = vpop.f32.mrb[0].mxu0 }
 0x12b   :  { %v166_v9 = vadd.f32 %v1884_v7, %v165_v8  ;;  %v2002_v10 = vpop.f32.mrb[1].mxu0  ;;  %v2575_v13 = vpop.f32.mrb[0].mxu1  ;;  %v2633_v7 = vld [vmem:[#allocation11] sm:$0xff]  }
 0x12c   :  { %v168_v11 = vpop.f32.mrb[2].mxu0  ;;  %v2010_v14 = vpop.f32.mrb[1].mxu1 }
 0x12d   :  { %172 = vst.msk [vmem:[#allocation2] sm:$0xff] %vm171_vm2, %v166_v9  ;;  %v2003_v12 = vpop.f32.mrb[3].mxu0  ;;  %v242_v15 = vpop.f32.mrb[2].mxu1  ;;  %v2636_v9 = vld [vmem:[#allocation11 + $0x8] sm:$0xff]  }
 0x12e   :  { %v2011_v16 = vpop.f32.mrb[3].mxu1 }
 0x134   :  { %v2577_v17 = vld [vmem:[#allocation2] sm:$0x3] }
 0x135   :  { %v245_v18 = vadd.f32 %v2575_v13, %v2577_v17 }
 0x137   :  { %v247_v19 = vsel %vm246_vm3, %v245_v18, -inf }
 0x138   :  { %248 = vmax.xlane.f32.xlu0 %v247_v19 }
 0x1c5   :  { %v249_v20 = vpop.xlane.xlu0 %248 }
 0x1c6   :  { %v250_v21 = vsub.f32 %v245_v18, %v249_v20 }
 0x1c8   :  { %v251_v22 = vmul.f32 1.442695, %v250_v21 }
 0x1ca   :  { %2202 = vpow2.f32 %v251_v22 }
 0x1d4   :  { %v2203_v23 = vpop.eup %2202 }
 0x1d5   :  { %v253_v24 = vsel %vm246_vm3, %v2203_v23, 0.0 }
 0x1d6   :  { %254 = vadd.xlane.f32.xlu0 %v253_v24 }
 0x1ec   :  { %533 = vrot.lane.b32.xlu0 %v1901_v25, %s2399_s2 }
 0x263   :  { %v255_v30 = vpop.xlane.xlu0 %254 }
 0x264   :  { %2204 = vrcp.f32 %v255_v30 }
 0x267   :  { %v2643_v15 = vpop.permute.xlu0 %533 }
 0x268   :  { %v536_v16 = vadd.f32 %v2643_v15, %v2575_v13 }
 0x26e   :  { %v2205_v36 = vpop.eup %2204 }
 0x26f   :  { %v257_v38 = vmul.f32 %v2205_v36, %v2203_v23 }
 0x271   :  { %258 = vst.msk [vmem:[#allocation3] sm:$0x3] %vm246_vm3, %v257_v38  ;;  %v259_v39 = vpack.c.bf16 %v257_v38, %v257_v38 }
 0x273   :  { %v267_v40 = vrot.slane %v259_v39, %v2595_v37 }
 0x275   :  { %v274_v41 = vrot.slane %v267_v40, %v2595_v37 }
 0x277   :  { %v1890_v43 = vpack.i.b16 %v274_v41, %v274_v41  ;;  %v276_v44 = vunpack.i.h.s16 %v274_v41 }
 0x279   :  { %v281_v45 = vrot.slane %v1890_v43, %v2600_v42  ;;  %v330_v46 = vpack.i.b16 %v276_v44, %v276_v44 }
 0x27b   :  { %2015 = vmatmul.mubr.msk.bf16.vlgmr.msra.gmra.mrb[4].mxu0 %vm282_vm5, %v281_v45  ;;  %v334_v47 = vrot.slane %v330_v46, %v2600_v42 }
 0x27c   :  { %2028 = vmatprep.mubr.msk.bf16.mxu0 %vm2397_vm0, %v2396_v0  ;;  %2025 = vmatpush3.bf16.msra.mxu0 %v2613_v48 }
 0x27d   :  { %2021 = vmatmul.mubr.msk.bf16.vlgmr.msra.gmra.mrb[4].mxu1 %vm282_vm5, %v334_v47  ;;  %2026 = vmatprep.subr.bf16.mxu0 %v2396_v0  ;;  %v2675_v47 = vld [vmem:[#allocation2 + $0x2] sm:$0x3] }
 0x27e   :  { %2036 = vmatprep.mubr.msk.bf16.mxu1 %vm2397_vm0, %v2396_v0  ;;  %2033 = vmatpush3.bf16.msra.mxu1 %v2633_v7 }
 0x27f   :  { %2034 = vmatprep.subr.bf16.mxu1 %v2396_v0 }
 0x280   :  { %2027 = vmatpush3.bf16.msra.mxu0 %v2620_v49 }
 0x281   :  { %2040 = vmatprep.subr.bf16.mxu0 %v2396_v0 }
 0x282   :  { %2035 = vmatpush3.bf16.msra.mxu1 %v2636_v9 }
 0x283   :  { %2048 = vmatprep.subr.bf16.mxu1 %v2396_v0 }
 0x34e   :  { %v324_v50 = vpop.f32.mrb[4].mxu0 }
 0x34f   :  { %v2016_v51 = vpop.f32.mrb[5].mxu0  ;;  %v381_v54 = vpack.c.bf16 %v324_v50, %v324_v50 }
 0x350   :  { %v327_v52 = vpop.f32.mrb[6].mxu0  ;;  %v375_v53 = vpop.f32.mrb[4].mxu1 }
 0x351   :  { %v382_v55 = vpack.c.bf16 %v375_v53, %v375_v53  ;;  %v2017_v56 = vpop.f32.mrb[7].mxu0  ;;  %v2022_v57 = vpop.f32.mrb[5].mxu1  ;;  %v385_v61 = vunpack.c.l.b16 %v381_v54 }
 0x352   :  { %v378_v58 = vpop.f32.mrb[6].mxu1 }
 0x353   :  { %v386_v59 = vunpack.c.l.b16 %v382_v55  ;;  %v2023_v60 = vpop.f32.mrb[7].mxu1 }
 0x355   :  { %v387_v62 = vrot.slane %v386_v59, 7 }
 0x357   :  { %v389_v63 = vsel %vm388_vm6, %v387_v62, %v385_v61 }
 0x358   :  { %v390_v1 = vpack.c.b16 %v389_v63, %v389_v63 }
 0x35a   :  { %2029 = vmatmul.mubr.msk.bf16.vlgmr.msra.gmra.mrb[8].mxu0 %vm127_vm1, %v390_v1 }
 0x35b   :  { %2041 = vmatpush3.bf16.msra.mxu0 %v2558_v4  ;;  %2044 = vmatprep.mubr.msk.bf16.mxu0 %vm2397_vm0, %v2396_v0 }
 0x35c   :  { %2042 = vmatprep.subr.bf16.mxu0 %v2396_v0 }
 0x35f   :  { %2043 = vmatpush3.bf16.msra.mxu0 %v2563_v6 }
 0x360   :  { %2054 = vmatprep.subr.bf16.mxu0 %v2396_v0 }
 0x42d   :  { %v440_v2 = vpop.f32.mrb[8].mxu0 }
 0x42e   :  { %447 = vrot.lane.b32.xlu1 %v440_v2, %s2401_s6  ;;  %v2030_v3 = vpop.f32.mrb[9].mxu0 }
 0x42f   :  { %v443_v5 = vpop.f32.mrb[10].mxu0 }
 0x430   :  { %v2031_v8 = vpop.f32.mrb[11].mxu0 }
 0x4a0   :  { %v448_v10 = vpop.permute.xlu1 %447 }
 0x4a1   :  { %v450_v11 = vadd.f32 %v448_v10, %v2577_v17  ;;  %v2658_v17 = vld [vmem:[%s2920_s8] ss:$0 sm:$0xff]  ;;  %s2404_s8 = smov 96  }
 0x4a3   :  { %v451_v12 = vmax.f32 %v450_v11, 0.0 }
 0x4a5   :  { %v452_v14 = vpack.c.bf16 %v451_v12, %v451_v12 }
 0x4a7   :  { %460 = vrot.lane.b32.xlu1 %v452_v14, %s2402_s17 }
 0x4ab   :  { %518 = vrot.lane.b32.xlu1 %v2575_v13, %s2402_s17 }
 0x4af   :  { %538 = vrot.lane.b32.xlu1 %v536_v16, %s2403_s20 }
 0x519   :  { %v461_v18 = vpop.permute.xlu1 %460 }
 0x51a   :  { %2037 = vmatmul.mubr.msk.bf16.vlgmr.msra.gmra.mrb[8].mxu1 %vm127_vm1, %v461_v18 }
 0x51b   :  { %2049 = vmatpush3.bf16.msra.mxu1 %v2586_v28  ;;  %2050 = vmatprep.mubr.msk.bf16.mxu1 %vm2397_vm0, %v2396_v0 }
 0x51c   :  { %2060 = vmatprep.subr.bf16.mxu1 %v2396_v0 }
 0x51d   :  { %v519_v21 = vpop.permute.xlu1 %518 }
 0x521   :  { %v539_v31 = vpop.permute.xlu1 %538 }
 0x5ed   :  { %v511_v19 = vpop.f32.mrb[8].mxu1 }
 0x5ee   :  { %v512_v13 = vadd.f32 %v2658_v17, %v511_v19  ;;  %v2038_v20 = vpop.f32.mrb[9].mxu1 }
 0x5ef   :  { %v514_v22 = vpop.f32.mrb[10].mxu1 }
 0x5f0   :  { %v521_v23 = vadd.f32 %v519_v21, %v512_v13  ;;  %v2039_v24 = vpop.f32.mrb[11].mxu1 }
 0x5f2   :  { %v1900_v25 = vmul.f32 -1.442695, %v521_v23 }
 0x5f4   :  { %2206 = vpow2.f32 %v1900_v25 }
 0x5fe   :  { %v2207_v26 = vpop.eup %2206 }
 0x5ff   :  { %v525_v27 = vadd.f32 1.0, %v2207_v26 }
 0x601   :  { %2208 = vrcp.f32 %v525_v27 }
 0x60b   :  { %v2209_v30 = vpop.eup %2208 }
 0x60c   :  { %v541_v32 = vmul.f32 %v2209_v30, %v539_v31  ;;  %v548_v38 = vsub.f32 1.0, %v2209_v30  ;;  %v554_v40 = vmul.f32 0.0, %v2209_v30 }
 0x60e   :  { %543 = vrot.lane.b32.xlu1 %v541_v32, %s2391_s28 }
 0x680   :  { %v544_v34 = vpop.permute.xlu1 %543 }
 0x681   :  { %v546_v35 = vadd.f32 %v544_v34, %v512_v13 }
 0x683   :  { %2210 = vtanh.f32 %v546_v35 }
 0x68d   :  { %v2211_v36 = vpop.eup %2210 }
 0x68e   :  { %550 = vrot.lane.b32.xlu1 %v2211_v36, %s2404_s8 }
 0x700   :  { %v551_v39 = vpop.permute.xlu1 %550 }
 0x701   :  { %v553_v41 = vmul.f32 %v551_v39, %v548_v38 }
 0x703   :  { %v2663_v43 = vadd.f32 %v554_v40, %v553_v41 }
 0x705   :  { %v562_v44 = vpack.c.bf16 %v2663_v43, %v2663_v43 }
 0x707   :  { %566 = vrot.lane.b32.xlu1 %v562_v44, %s2404_s8 }
 0x779   :  { %v567_v45 = vpop.permute.xlu1 %566 }
 0x77a   :  { %2045 = vmatmul.mubr.msk.bf16.vlgmr.msra.gmra.mrb[12].mxu0 %vm127_vm1, %v567_v45 }
 0x77b   :  { %2055 = vmatpush3.bf16.msra.mxu0 %v2588_v29  ;;  %2056 = vmatprep.mubr.msk.bf16.mxu0 %vm2397_vm0, %v2396_v0 }
 0x77c   :  { %2068 = vmatprep.subr.bf16.mxu0 %v2396_v0 }
 0x84d   :  { %v2673_v46 = vpop.f32.mrb[12].mxu0 }
 0x84e   :  { %v2046_v50 = vpop.f32.mrb[13].mxu0  ;;  %v611_v51 = vadd.f32 %v2673_v46, %v2675_v47  ;;  %v855_v35 = vadd.f32 %v2673_v46, %v2643_v15 }
 0x84f   :  { %v608_v52 = vpop.f32.mrb[14].mxu0 }
 0x850   :  { %v2047_v53 = vpop.f32.mrb[15].mxu0  ;;  %v612_v54 = vsel %vm246_vm3, %v611_v51, -inf }
 0x851   :  { %613 = vmax.xlane.f32.xlu1 %v612_v54 }
 0x8de   :  { %v614_v55 = vpop.xlane.xlu1 %613 }
 0x8df   :  { %v615_v56 = vsub.f32 %v611_v51, %v614_v55 }
 0x8e1   :  { %v616_v57 = vmul.f32 1.442695, %v615_v56 }
 0x8e3   :  { %2212 = vpow2.f32 %v616_v57 }
 0x8ed   :  { %v2213_v58 = vpop.eup %2212 }
 0x8ee   :  { %v618_v59 = vsel %vm246_vm3, %v2213_v58, 0.0 }
 0x8ef   :  { %619 = vadd.xlane.f32.xlu0 %v618_v59 }
 0x97c   :  { %v620_v60 = vpop.xlane.xlu0 %619 }
 0x97d   :  { %2214 = vrcp.f32 %v620_v60 }
 0x987   :  { %v2215_v61 = vpop.eup %2214 }
 0x988   :  { %v622_v62 = vmul.f32 %v2215_v61, %v2213_v58 }
 0x98a   :  { %624 = vst.msk [vmem:[#allocation3 + $0x2] sm:$0x3] %vm246_vm3, %v622_v62  ;;  %v625_v63 = vpack.c.bf16 %v622_v62, %v622_v62 }
 0x98c   :  { %v633_v1 = vrot.slane %v625_v63, %v2595_v37 }
 0x98e   :  { %v640_v2 = vrot.slane %v633_v1, %v2595_v37 }
 0x990   :  { %v1903_v3 = vpack.i.b16 %v640_v2, %v640_v2  ;;  %v642_v5 = vunpack.i.h.s16 %v640_v2 }
 0x992   :  { %v647_v8 = vrot.slane %v1903_v3, %v2600_v42  ;;  %v691_v10 = vpack.i.b16 %v642_v5, %v642_v5 }
 0x994   :  { %2051 = vmatmul.mubr.msk.bf16.vlgmr.msra.gmra.mrb[12].mxu1 %vm282_vm5, %v647_v8  ;;  %v695_v11 = vrot.slane %v691_v10, %v2600_v42 }
 0x995   :  { %2061 = vmatpush3.bf16.msra.mxu1 %v2613_v48  ;;  %2064 = vmatprep.mubr.msk.bf16.mxu1 %vm2397_vm0, %v2396_v0 }
 0x996   :  { %2057 = vmatmul.mubr.msk.bf16.vlgmr.msra.gmra.mrb[16].mxu0 %vm282_vm5, %v695_v11  ;;  %2062 = vmatprep.subr.bf16.mxu1 %v2396_v0 }
 0x997   :  { %2069 = vmatpush3.bf16.msra.mxu0 %v2633_v7  ;;  %2072 = vmatprep.mubr.msk.bf16.mxu0 %vm2397_vm0, %v2396_v0 }
 0x998   :  { %2070 = vmatprep.subr.bf16.mxu0 %v2396_v0 }
 0x999   :  { %2063 = vmatpush3.bf16.msra.mxu1 %v2620_v49 }
 0x99a   :  { %2076 = vmatprep.subr.bf16.mxu1 %v2396_v0 }
 0x99b   :  { %2071 = vmatpush3.bf16.msra.mxu0 %v2636_v9 }
 0x99c   :  { %2084 = vmatprep.subr.bf16.mxu0 %v2396_v0 }
 0xa67   :  { %v685_v12 = vpop.f32.mrb[12].mxu1 }
 0xa68   :  { %v2052_v14 = vpop.f32.mrb[13].mxu1  ;;  %v739_v19 = vpack.c.bf16 %v685_v12, %v685_v12  ;;  %v2737_v12 = vld [vmem:[#allocation2 + $0x4] sm:$0x3] }
 0xa69   :  { %v688_v16 = vpop.f32.mrb[14].mxu1  ;;  %v733_v18 = vpop.f32.mrb[16].mxu0 }
 0xa6a   :  { %v740_v13 = vpack.c.bf16 %v733_v18, %v733_v18  ;;  %v2053_v20 = vpop.f32.mrb[15].mxu1  ;;  %v2058_v21 = vpop.f32.mrb[17].mxu0  ;;  %v743_v25 = vunpack.c.l.b16 %v739_v19 }
 0xa6b   :  { %v736_v22 = vpop.f32.mrb[18].mxu0 }
 0xa6c   :  { %v744_v23 = vunpack.c.l.b16 %v740_v13  ;;  %v2059_v24 = vpop.f32.mrb[19].mxu0 }
 0xa6e   :  { %v745_v26 = vrot.slane %v744_v23, 7 }
 0xa70   :  { %v746_v27 = vsel %vm388_vm6, %v745_v26, %v743_v25 }
 0xa71   :  { %v747_v30 = vpack.c.b16 %v746_v27, %v746_v27 }
 0xa73   :  { %2065 = vmatmul.mubr.msk.bf16.vlgmr.msra.gmra.mrb[16].mxu1 %vm127_vm1, %v747_v30 }
 0xa74   :  { %2077 = vmatpush3.bf16.msra.mxu1 %v2558_v4  ;;  %2080 = vmatprep.mubr.msk.bf16.mxu1 %vm2397_vm0, %v2396_v0 }
 0xa75   :  { %2078 = vmatprep.subr.bf16.mxu1 %v2396_v0 }
 0xa78   :  { %2079 = vmatpush3.bf16.msra.mxu1 %v2563_v6 }
 0xa79   :  { %2090 = vmatprep.subr.bf16.mxu1 %v2396_v0 }
 0xb46   :  { %v785_v31 = vpop.f32.mrb[16].mxu1 }
 0xb47   :  { %792 = vrot.lane.b32.xlu0 %v785_v31, %s2401_s6  ;;  %v2066_v32 = vpop.f32.mrb[17].mxu1 }
 0xb48   :  { %v788_v34 = vpop.f32.mrb[18].mxu1 }
 0xb49   :  { %v2067_v36 = vpop.f32.mrb[19].mxu1 }
 0xb4b   :  { %857 = vrot.lane.b32.xlu0 %v855_v35, %s2403_s20 }
 0xbb9   :  { %v793_v38 = vpop.permute.xlu0 %792 }
 0xbba   :  { %v795_v39 = vadd.f32 %v793_v38, %v2675_v47 }
 0xbbc   :  { %v796_v40 = vmax.f32 %v795_v39, 0.0 }
 0xbbd   :  { %v858_v58 = vpop.permute.xlu0 %857 }
 0xbbe   :  { %v797_v41 = vpack.c.bf16 %v796_v40, %v796_v40 }
 0xbc0   :  { %799 = vrot.lane.b32.xlu1 %v797_v41, %s2402_s17 }
 0xbc4   :  { %845 = vrot.lane.b32.xlu1 %v2673_v46, %s2402_s17 }
 0xc32   :  { %v800_v44 = vpop.permute.xlu1 %799 }
 0xc33   :  { %2073 = vmatmul.mubr.msk.bf16.vlgmr.msra.gmra.mrb[20].mxu0 %vm127_vm1, %v800_v44 }
 0xc34   :  { %2085 = vmatpush3.bf16.msra.mxu0 %v2586_v28  ;;  %2086 = vmatprep.mubr.msk.bf16.mxu0 %vm2397_vm0, %v2396_v0 }
 0xc35   :  { %2096 = vmatprep.subr.bf16.mxu0 %v2396_v0 }
 0xc36   :  { %v846_v51 = vpop.permute.xlu1 %845 }
 0xd06   :  { %v838_v45 = vpop.f32.mrb[20].mxu0 }
 0xd07   :  { %v839_v47 = vadd.f32 %v2658_v17, %v838_v45  ;;  %v2074_v50 = vpop.f32.mrb[21].mxu0 }
 0xd08   :  { %v841_v52 = vpop.f32.mrb[22].mxu0 }
 0xd09   :  { %v848_v53 = vadd.f32 %v846_v51, %v839_v47  ;;  %v2075_v54 = vpop.f32.mrb[23].mxu0 }
 0xd0b   :  { %v1908_v55 = vmul.f32 -1.442695, %v848_v53 }
 0xd0d   :  { %2216 = vpow2.f32 %v1908_v55 }
 0xd17   :  { %v2217_v46 = vpop.eup %2216 }
 0xd18   :  { %v852_v56 = vadd.f32 1.0, %v2217_v46 }
 0xd1a   :  { %2218 = vrcp.f32 %v852_v56 }
 0xd24   :  { %v2219_v57 = vpop.eup %2218 }
 0xd25   :  { %v860_v59 = vmul.f32 %v2219_v57, %v858_v58  ;;  %v867_v63 = vsub.f32 1.0, %v2219_v57  ;;  %v873_v2 = vmul.f32 %v2219_v57, %v2663_v43 }
 0xd27   :  { %862 = vrot.lane.b32.xlu1 %v860_v59, %s2391_s28 }
 0xd99   :  { %v863_v60 = vpop.permute.xlu1 %862 }
 0xd9a   :  { %v865_v61 = vadd.f32 %v863_v60, %v839_v47 }
 0xd9c   :  { %2220 = vtanh.f32 %v865_v61 }
 0xda6   :  { %v2221_v62 = vpop.eup %2220 }
 0xda7   :  { %869 = vrot.lane.b32.xlu0 %v2221_v62, %s2404_s8 }
 0xe19   :  { %v870_v1 = vpop.permute.xlu0 %869 }
 0xe1a   :  { %v872_v3 = vmul.f32 %v870_v1, %v867_v63 }
 0xe1c   :  { %v2725_v5 = vadd.f32 %v873_v2, %v872_v3 }
 0xe1e   :  { %v881_v8 = vpack.c.bf16 %v2725_v5, %v2725_v5 }
 0xe20   :  { %885 = vrot.lane.b32.xlu1 %v881_v8, %s2404_s8 }
 0xe92   :  { %v886_v10 = vpop.permute.xlu1 %885 }
 0xe93   :  { %2081 = vmatmul.mubr.msk.bf16.vlgmr.msra.gmra.mrb[20].mxu1 %vm127_vm1, %v886_v10 }
 0xe94   :  { %2091 = vmatpush3.bf16.msra.mxu1 %v2588_v29  ;;  %2092 = vmatprep.mubr.msk.bf16.mxu1 %vm2397_vm0, %v2396_v0 }
 0xe95   :  { %2104 = vmatprep.subr.bf16.mxu1 %v2396_v0 }
 0xf66   :  { %v2735_v11 = vpop.f32.mrb[20].mxu1 }
 0xf67   :  { %v2082_v14 = vpop.f32.mrb[21].mxu1  ;;  %v930_v16 = vadd.f32 %v2735_v11, %v2737_v12 }
 0xf68   :  { %v927_v18 = vpop.f32.mrb[22].mxu1 }
 0xf69   :  { %v2083_v19 = vpop.f32.mrb[23].mxu1  ;;  %v931_v13 = vsel %vm246_vm3, %v930_v16, -inf }
 0xf6a   :  { %932 = vmax.xlane.f32.xlu0 %v931_v13 }
 0xff7   :  { %v933_v20 = vpop.xlane.xlu0 %932 }
 0xff8   :  { %v934_v21 = vsub.f32 %v930_v16, %v933_v20 }
 0xffa   :  { %v935_v22 = vmul.f32 1.442695, %v934_v21 }
 0xffc   :  { %2222 = vpow2.f32 %v935_v22 }
0x1006   :  { %v2223_v23 = vpop.eup %2222 }
0x1007   :  { %v937_v24 = vsel %vm246_vm3, %v2223_v23, 0.0 }
0x1008   :  { %938 = vadd.xlane.f32.xlu1 %v937_v24 }
0x1095   :  { %v939_v25 = vpop.xlane.xlu1 %938 }
0x1096   :  { %2224 = vrcp.f32 %v939_v25 }
0x10a0   :  { %v2225_v26 = vpop.eup %2224 }
0x10a1   :  { %v941_v27 = vmul.f32 %v2225_v26, %v2223_v23 }
0x10a3   :  { %943 = vst.msk [vmem:[#allocation3 + $0x4] sm:$0x3] %vm246_vm3, %v941_v27  ;;  %v944_v30 = vpack.c.bf16 %v941_v27, %v941_v27 }
0x10a5   :  { %v952_v31 = vrot.slane %v944_v30, %v2595_v37 }
0x10a7   :  { %v959_v32 = vrot.slane %v952_v31, %v2595_v37 }
0x10a9   :  { %v1910_v34 = vpack.i.b16 %v959_v32, %v959_v32  ;;  %v961_v35 = vunpack.i.h.s16 %v959_v32 }
0x10ab   :  { %v966_v36 = vrot.slane %v1910_v34, %v2600_v42  ;;  %v1010_v38 = vpack.i.b16 %v961_v35, %v961_v35 }
0x10ad   :  { %2087 = vmatmul.mubr.msk.bf16.vlgmr.msra.gmra.mrb[24].mxu0 %vm282_vm5, %v966_v36  ;;  %v1014_v39 = vrot.slane %v1010_v38, %v2600_v42  ;;  %v2799_v38 = vld [vmem:[#allocation2 + $0x6] sm:$0x3] }
0x10ae   :  { %2097 = vmatpush3.bf16.msra.mxu0 %v2613_v48  ;;  %2100 = vmatprep.mubr.msk.bf16.mxu0 %vm2397_vm0, %v2396_v0 }
0x10af   :  { %2093 = vmatmul.mubr.msk.bf16.vlgmr.msra.gmra.mrb[24].mxu1 %vm282_vm5, %v1014_v39  ;;  %2098 = vmatprep.subr.bf16.mxu0 %v2396_v0 }
0x10b0   :  { %2105 = vmatpush3.bf16.msra.mxu1 %v2633_v7  ;;  %2108 = vmatprep.mubr.msk.bf16.mxu1 %vm2397_vm0, %v2396_v0 }
0x10b1   :  { %2106 = vmatprep.subr.bf16.mxu1 %v2396_v0 }
0x10b2   :  { %2099 = vmatpush3.bf16.msra.mxu0 %v2620_v49 }
0x10b3   :  { %2112 = vmatprep.subr.bf16.mxu0 %v2396_v0 }
0x10b4   :  { %2107 = vmatpush3.bf16.msra.mxu1 %v2636_v9 }
0x10b5   :  { %2120 = vmatprep.subr.bf16.mxu1 %v2396_v0 }
0x1180   :  { %v1004_v40 = vpop.f32.mrb[24].mxu0 }
0x1181   :  { %v2088_v41 = vpop.f32.mrb[25].mxu0  ;;  %v1058_v47 = vpack.c.bf16 %v1004_v40, %v1004_v40 }
0x1182   :  { %v1007_v44 = vpop.f32.mrb[26].mxu0  ;;  %v1052_v45 = vpop.f32.mrb[24].mxu1 }
0x1183   :  { %v1059_v50 = vpack.c.bf16 %v1052_v45, %v1052_v45  ;;  %v2089_v51 = vpop.f32.mrb[27].mxu0  ;;  %v2094_v52 = vpop.f32.mrb[25].mxu1  ;;  %v1062_v46 = vunpack.c.l.b16 %v1058_v47 }
0x1184   :  { %v1055_v53 = vpop.f32.mrb[26].mxu1 }
0x1185   :  { %v1063_v54 = vunpack.c.l.b16 %v1059_v50  ;;  %v2095_v55 = vpop.f32.mrb[27].mxu1 }
0x1187   :  { %v1064_v56 = vrot.slane %v1063_v54, 7 }
0x1189   :  { %v1065_v57 = vsel %vm388_vm6, %v1064_v56, %v1062_v46 }
0x118a   :  { %v1066_v58 = vpack.c.b16 %v1065_v57, %v1065_v57 }
0x118c   :  { %2101 = vmatmul.mubr.msk.bf16.vlgmr.msra.gmra.mrb[28].mxu0 %vm127_vm1, %v1066_v58 }
0x118d   :  { %2113 = vmatpush3.bf16.msra.mxu0 %v2558_v4  ;;  %2116 = vmatprep.mubr.msk.bf16.mxu0 %vm2397_vm0, %v2396_v0 }
0x118e   :  { %2114 = vmatprep.subr.bf16.mxu0 %v2396_v0 }
0x1191   :  { %2115 = vmatpush3.bf16.msra.mxu0 %v2563_v6  ;;  %v1174_v6 = vadd.f32 %v2735_v11, %v2643_v15 }
0x1192   :  { %2126 = vmatprep.subr.bf16.mxu0 %v2396_v0 }
0x125f   :  { %v1104_v59 = vpop.f32.mrb[28].mxu0 }
0x1260   :  { %1111 = vrot.lane.b32.xlu0 %v1104_v59, %s2401_s6  ;;  %v2102_v60 = vpop.f32.mrb[29].mxu0 }
0x1261   :  { %v1107_v61 = vpop.f32.mrb[30].mxu0 }
0x1262   :  { %v2103_v62 = vpop.f32.mrb[31].mxu0 }
0x1264   :  { %1164 = vrot.lane.b32.xlu0 %v2735_v11, %s2402_s17 }
0x12d2   :  { %v1112_v63 = vpop.permute.xlu0 %1111 }
0x12d3   :  { %v1114_v4 = vadd.f32 %v1112_v63, %v2737_v12 }
0x12d5   :  { %v1115_v1 = vmax.f32 %v1114_v4, 0.0 }
0x12d6   :  { %v1165_v14 = vpop.permute.xlu0 %1164 }
0x12d7   :  { %v1116_v2 = vpack.c.bf16 %v1115_v1, %v1115_v1 }
0x12d9   :  { %1118 = vrot.lane.b32.xlu1 %v1116_v2, %s2402_s17 }
0x12dd   :  { %1176 = vrot.lane.b32.xlu1 %v1174_v6, %s2403_s20 }
0x134b   :  { %v1119_v3 = vpop.permute.xlu1 %1118 }
0x134c   :  { %2109 = vmatmul.mubr.msk.bf16.vlgmr.msra.gmra.mrb[28].mxu1 %vm127_vm1, %v1119_v3 }
0x134d   :  { %2121 = vmatpush3.bf16.msra.mxu1 %v2586_v28  ;;  %2122 = vmatprep.mubr.msk.bf16.mxu1 %vm2397_vm0, %v2396_v0 }
0x134e   :  { %2132 = vmatprep.subr.bf16.mxu1 %v2396_v0 }
0x134f   :  { %v1177_v28 = vpop.permute.xlu1 %1176 }
0x141f   :  { %v1157_v8 = vpop.f32.mrb[28].mxu1 }
0x1420   :  { %v1158_v10 = vadd.f32 %v2658_v17, %v1157_v8  ;;  %v2110_v12 = vpop.f32.mrb[29].mxu1 }
0x1421   :  { %v1160_v16 = vpop.f32.mrb[30].mxu1 }
0x1422   :  { %v1167_v18 = vadd.f32 %v1165_v14, %v1158_v10  ;;  %v2111_v11 = vpop.f32.mrb[31].mxu1 }
0x1424   :  { %v1915_v19 = vmul.f32 -1.442695, %v1167_v18 }
0x1426   :  { %2226 = vpow2.f32 %v1915_v19 }
0x1430   :  { %v2227_v13 = vpop.eup %2226 }
0x1431   :  { %v1171_v20 = vadd.f32 1.0, %v2227_v13 }
0x1433   :  { %2228 = vrcp.f32 %v1171_v20 }
0x143d   :  { %v2229_v21 = vpop.eup %2228 }
0x143e   :  { %v1179_v22 = vmul.f32 %v2229_v21, %v1177_v28  ;;  %v1186_v26 = vsub.f32 1.0, %v2229_v21  ;;  %v1192_v30 = vmul.f32 %v2229_v21, %v2725_v5 }
0x1440   :  { %1181 = vrot.lane.b32.xlu0 %v1179_v22, %s2391_s28 }
0x14b2   :  { %v1182_v23 = vpop.permute.xlu0 %1181 }
0x14b3   :  { %v1184_v24 = vadd.f32 %v1182_v23, %v1158_v10 }
0x14b5   :  { %2230 = vtanh.f32 %v1184_v24 }
0x14bf   :  { %v2231_v25 = vpop.eup %2230 }
0x14c0   :  { %1188 = vrot.lane.b32.xlu1 %v2231_v25, %s2404_s8 }
0x1532   :  { %v1189_v27 = vpop.permute.xlu1 %1188 }
0x1533   :  { %v1191_v31 = vmul.f32 %v1189_v27, %v1186_v26 }
0x1535   :  { %v2787_v32 = vadd.f32 %v1192_v30, %v1191_v31 }
0x1537   :  { %v1200_v34 = vpack.c.bf16 %v2787_v32, %v2787_v32 }
0x1539   :  { %1204 = vrot.lane.b32.xlu0 %v1200_v34, %s2404_s8 }
0x15ab   :  { %v1205_v35 = vpop.permute.xlu0 %1204 }
0x15ac   :  { %2117 = vmatmul.mubr.msk.bf16.vlgmr.msra.gmra.mrb[32].mxu0 %vm127_vm1, %v1205_v35 }
0x15ad   :  { %2127 = vmatpush3.bf16.msra.mxu0 %v2588_v29  ;;  %2128 = vmatprep.mubr.msk.bf16.mxu0 %vm2397_vm0, %v2396_v0 }
0x15ae   :  { %2140 = vmatprep.subr.bf16.mxu0 %v2396_v0 }
0x167f   :  { %v2797_v36 = vpop.f32.mrb[32].mxu0 }
0x1680   :  { %v2118_v39 = vpop.f32.mrb[33].mxu0  ;;  %v1249_v40 = vadd.f32 %v2797_v36, %v2799_v38  ;;  %v1493_v11 = vadd.f32 %v2797_v36, %v2643_v15 }
0x1681   :  { %v1246_v41 = vpop.f32.mrb[34].mxu0 }
0x1682   :  { %v2119_v44 = vpop.f32.mrb[35].mxu0  ;;  %v1250_v45 = vsel %vm246_vm3, %v1249_v40, -inf }
0x1683   :  { %1251 = vmax.xlane.f32.xlu1 %v1250_v45 }
0x1710   :  { %v1252_v47 = vpop.xlane.xlu1 %1251 }
0x1711   :  { %v1253_v29 = vsub.f32 %v1249_v40, %v1252_v47  ;;  %v2201_v47 = vld [vmem:[%s2922_s10 + $0x8] sm:$0xff]  }
0x1713   :  { %v1254_v50 = vmul.f32 1.442695, %v1253_v29 }
0x1715   :  { %2232 = vpow2.f32 %v1254_v50 }
0x171f   :  { %v2233_v51 = vpop.eup %2232 }
0x1720   :  { %v1256_v52 = vsel %vm246_vm3, %v2233_v51, 0.0 }
0x1721   :  { %1257 = vadd.xlane.f32.xlu0 %v1256_v52 }
0x17ae   :  { %v1258_v53 = vpop.xlane.xlu0 %1257 }
0x17af   :  { %2234 = vrcp.f32 %v1258_v53 }
0x17b9   :  { %v2235_v54 = vpop.eup %2234 }
0x17ba   :  { %v1260_v55 = vmul.f32 %v2235_v54, %v2233_v51  ;;  %v1599_v54 = vld [vmem:[%s2913_s1] sm:$0xff] }
0x17bb   :  { %vm1612_vm10 = vcmp.ne.s32.totalorder %v1599_v54, 0 }
0x17bc   :  { %1262 = vst.msk [vmem:[#allocation3 + $0x6] sm:$0x3] %vm246_vm3, %v1260_v55  ;;  %v1263_v46 = vpack.c.bf16 %v1260_v55, %v1260_v55 }
0x17be   :  { %v1271_v56 = vrot.slane %v1263_v46, %v2595_v37 }
0x17c0   :  { %v1278_v57 = vrot.slane %v1271_v56, %v2595_v37 }
0x17c2   :  { %v1917_v58 = vpack.i.b16 %v1278_v57, %v1278_v57  ;;  %v1280_v59 = vunpack.i.h.s16 %v1278_v57  ;;  %v1923_v57 = vld [vmem:[%s2923_s11] ss:$0 sm:$0xff] }
0x17c4   :  { %v1285_v60 = vrot.slane %v1917_v58, %v2600_v42  ;;  %v1329_v61 = vpack.i.b16 %v1280_v59, %v1280_v59 }
0x17c6   :  { %2123 = vmatmul.mubr.msk.bf16.vlgmr.msra.gmra.mrb[32].mxu1 %vm282_vm5, %v1285_v60  ;;  %v1333_v62 = vrot.slane %v1329_v61, %v2600_v42 }
0x17c7   :  { %2133 = vmatpush3.bf16.msra.mxu1 %v2613_v48  ;;  %2136 = vmatprep.mubr.msk.bf16.mxu1 %vm2397_vm0, %v2396_v0 }
0x17c8   :  { %2129 = vmatmul.mubr.msk.bf16.vlgmr.msra.gmra.mrb[36].mxu0 %vm282_vm5, %v1333_v62  ;;  %2134 = vmatprep.subr.bf16.mxu1 %v2396_v0 }
0x17c9   :  { %2141 = vmatpush3.bf16.msra.mxu0 %v2633_v7  ;;  %2144 = vmatprep.mubr.msk.bf16.mxu0 %vm2397_vm0, %v2396_v0 }
0x17ca   :  { %2142 = vmatprep.subr.bf16.mxu0 %v2396_v0 }
0x17cb   :  { %2135 = vmatpush3.bf16.msra.mxu1 %v2620_v49 }
0x17cc   :  { %2148 = vmatprep.subr.bf16.mxu1 %v2396_v0 }
0x17cd   :  { %2143 = vmatpush3.bf16.msra.mxu0 %v2636_v9 }
0x17ce   :  { %2156 = vmatprep.subr.mxu0 %v2396_v0 }
0x1899   :  { %v1323_v37 = vpop.f32.mrb[32].mxu1 }
0x189a   :  { %v2124_v42 = vpop.f32.mrb[33].mxu1  ;;  %v1377_v4 = vpack.c.bf16 %v1323_v37, %v1323_v37 }
0x189b   :  { %v1326_v48 = vpop.f32.mrb[34].mxu1  ;;  %v1371_v63 = vpop.f32.mrb[36].mxu0 }
0x189c   :  { %v1378_v1 = vpack.c.bf16 %v1371_v63, %v1371_v63  ;;  %v2125_v7 = vpop.f32.mrb[35].mxu1  ;;  %v2130_v2 = vpop.f32.mrb[37].mxu0  ;;  %v1381_v10 = vunpack.c.l.b16 %v1377_v4 }
0x189d   :  { %v1374_v6 = vpop.f32.mrb[38].mxu0 }
0x189e   :  { %v1382_v3 = vunpack.c.l.b16 %v1378_v1  ;;  %v2131_v8 = vpop.f32.mrb[39].mxu0  ;;  %v2405_v6 = vmov 1.0  }
0x18a0   :  { %v1383_v12 = vrot.slane %v1382_v3, 7  ;;  %v1615_v3 = vld [vmem:[%s2924_s12] sm:$0xf] }
0x18a2   :  { %v1384_v49 = vsel %vm388_vm6, %v1383_v12, %v1381_v10 }
0x18a3   :  { %v1385_v14 = vpack.c.b16 %v1384_v49, %v1384_v49 }
0x18a5   :  { %2137 = vmatmul.mubr.msk.bf16.vlgmr.msra.gmra.mrb[36].mxu1 %vm127_vm1, %v1385_v14  ;;  %v1927_v14 = vsel %vm1612_vm10, 1.0, %v2396_v0 }
0x18a6   :  { %2152 = vmatprep.mubr.msk.bf16.mxu1 %vm2397_vm0, %v2396_v0 }
0x1978   :  { %v1423_v9 = vpop.f32.mrb[36].mxu1 }
0x1979   :  { %1430 = vrot.lane.b32.xlu0 %v1423_v9, %s2401_s6  ;;  %v2138_v16 = vpop.f32.mrb[37].mxu1 }
0x197a   :  { %v1426_v18 = vpop.f32.mrb[38].mxu1 }
0x197b   :  { %v2139_v19 = vpop.f32.mrb[39].mxu1 }
0x197d   :  { %1495 = vrot.lane.b32.xlu0 %v1493_v11, %s2403_s20  ;;  %v1777_v11 = vld [vmem:[#allocation3] sm:$0xff] }
0x19eb   :  { %v1431_v13 = vpop.permute.xlu0 %1430 }
0x19ec   :  { %v1433_v20 = vadd.f32 %v1431_v13, %v2799_v38 }
0x19ee   :  { %v1434_v21 = vmax.f32 %v1433_v20, 0.0  ;;  %v1776_v20 = vld [vmem:[%s2925_s13] sm:$0x7] }
0x19ef   :  { %v1496_v38 = vpop.permute.xlu0 %1495 }
0x19f0   :  { %v1435_v28 = vpack.c.bf16 %v1434_v21, %v1434_v21 }
0x19f2   :  { %1437 = vrot.lane.b32.xlu1 %v1435_v28, %s2402_s17 }
0x19f6   :  { %1483 = vrot.lane.b32.xlu1 %v2797_v36, %s2402_s17 }
0x1a64   :  { %v1438_v22 = vpop.permute.xlu1 %1437 }
0x1a65   :  { %2145 = vmatmul.mubr.msk.bf16.vlgmr.msra.gmra.mrb[40].mxu0 %vm127_vm1, %v1438_v22 }
0x1a66   :  { %2158 = vmatprep.mubr.msk.f32.mxu0 %vm2397_vm0, %v2396_v0 }
0x1a68   :  { %v1484_v25 = vpop.permute.xlu1 %1483 }
0x1b38   :  { %v1476_v15 = vpop.f32.mrb[40].mxu0 }
0x1b39   :  { %v1477_v23 = vadd.f32 %v2658_v17, %v1476_v15  ;;  %v2146_v24 = vpop.f32.mrb[41].mxu0 }
0x1b3a   :  { %v1479_v26 = vpop.f32.mrb[42].mxu0 }
0x1b3b   :  { %v1486_v27 = vadd.f32 %v1484_v25, %v1477_v23  ;;  %v2147_v30 = vpop.f32.mrb[43].mxu0 }
0x1b3d   :  { %v1922_v31 = vmul.f32 -1.442695, %v1486_v27 }
0x1b3f   :  { %2236 = vpow2.f32 %v1922_v31 }
0x1b49   :  { %v2237_v34 = vpop.eup %2236 }
0x1b4a   :  { %v1490_v35 = vadd.f32 1.0, %v2237_v34 }
0x1b4c   :  { %2238 = vrcp.f32 %v1490_v35 }
0x1b56   :  { %v2239_v36 = vpop.eup %2238 }
0x1b57   :  { %v1498_v39 = vmul.f32 %v2239_v36, %v1496_v38  ;;  %v1505_v29 = vsub.f32 1.0, %v2239_v36  ;;  %v1511_v51 = vmul.f32 %v2239_v36, %v2787_v32 }
0x1b59   :  { %1500 = vrot.lane.b32.xlu1 %v1498_v39, %s2391_s28 }
0x1b5d   :  { %557 = vrot.lane.b32.xlu1 %v2663_v43, %s2404_s8  ;;  %v2200_v43 = vld [vmem:[%s2922_s10] sm:$0xff]  }
0x1b5e   :  { %2149 = vmatpush3.bf16.msra.mxu1 %v2200_v43 }
0x1b5f   :  { %2150 = vmatprep.subr.bf16.mxu1 %v2396_v0 }
0x1b61   :  { %1195 = vrot.lane.b32.xlu1 %v2787_v32, %s2404_s8  ;;  %v1601_v32 = vand.u32 127, %v264_v33 }
0x1b62   :  { %2151 = vmatpush3.bf16.msra.mxu1 %v2201_v47 }
0x1b63   :  { %2161 = vmatprep.subr.mxu1 %v2396_v0 }
0x1bcb   :  { %v1501_v17 = vpop.permute.xlu1 %1500 }
0x1bcc   :  { %v1503_v40 = vadd.f32 %v1501_v17, %v1477_v23 }
0x1bce   :  { %2240 = vtanh.f32 %v1503_v40 }
0x1bcf   :  { %v558_v41 = vpop.permute.xlu1 %557 }
0x1bd0   :  { %561 = vst.msk [vmem:[#allocation4] sm:$0x3] %vm560_vm7, %v558_v41 }
0x1bd3   :  { %v1196_v44 = vpop.permute.xlu1 %1195 }
0x1bd4   :  { %1199 = vst.msk [vmem:[#allocation4 + $0x4] sm:$0x3] %vm560_vm7, %v1196_v44 }
0x1bd8   :  { %v2241_v45 = vpop.eup %2240 }
0x1bd9   :  { %1507 = vrot.lane.b32.xlu0 %v2241_v45, %s2404_s8 }
0x1bdd   :  { %876 = vrot.lane.b32.xlu0 %v2725_v5, %s2404_s8 }
0x1c4b   :  { %v1508_v50 = vpop.permute.xlu0 %1507 }
0x1c4c   :  { %v1510_v52 = vmul.f32 %v1508_v50, %v1505_v29 }
0x1c4e   :  { %v1512_v5 = vadd.f32 %v1511_v51, %v1510_v52 }
0x1c4f   :  { %v877_v53 = vpop.permute.xlu0 %876 }
0x1c50   :  { %880 = vst.msk [vmem:[#allocation4 + $0x2] sm:$0x3] %vm560_vm7, %v877_v53  ;;  %1514 = vrot.lane.b32.xlu0 %v1512_v5, %s2404_s8 }
0x1c54   :  { %1603 = vperm.xlu0 %2191, %v1599_v54  }
0x1cc2   :  { %v1515_v55 = vpop.permute.xlu0 %1514 }
0x1cc3   :  { %1518 = vst.msk [vmem:[#allocation4 + $0x6] sm:$0x3] %vm560_vm7, %v1515_v55 }
0x1cca   :  { %v1519_v46 = vld [vmem:[#allocation4] sm:$0xff] }
0x1ccb   :  { %v1520_v56 = vpack.c.bf16 %v1519_v46, %v1519_v46 }
0x1ccd   :  { %2153 = vmatmul.mubr.msk.bf16.vlgmr.msra.gmra.mrb[40].mxu1 %vm127_vm1, %v1520_v56 }
0x1cce   :  { %2163 = vmatprep.mubr.msk.f32.mxu1 %vm2397_vm0, %v2396_v0  ;;  %2162 = vmatpush3.msk.msra.mxu1 %vm1612_vm10, %v2405_v6 }
0x1cd3   :  { %v1604_v58 = vpop.permute.xlu0 %1603 }
0x1cd4   :  { %vm1605_vm9 = vcmp.eq.s32.totalorder %v1601_v32, %v1604_v58 }
0x1cd5   :  { %2164 = vmatmul.mubr.msk.f32.vlgmr.msra.gmra.mrb[44].mxu1 %vm282_vm5, %v1615_v3 }
0x1da0   :  { %v1581_v59 = vpop.f32.mrb[40].mxu1 }
0x1da1   :  { %v1582_v60 = vadd.f32 %v1923_v57, %v1581_v59  ;;  %v2154_v61 = vpop.f32.mrb[41].mxu1 }
0x1da2   :  { %v1584_v62 = vpop.f32.mrb[42].mxu1 }
0x1da3   :  { %v2155_v37 = vpop.f32.mrb[43].mxu1  ;;  %v1588_v42 = vsel %vm1587_vm8, %v1582_v60, -inf  ;;  %v1606_v48 = vsel %vm1605_vm9, %v1582_v60, 0.0 }
0x1da4   :  { %1589 = vmax.xlane.f32.xlu1 %v1588_v42  ;;  %v1607_v63 = vsel %vm1587_vm8, %v1606_v48, 0.0 }
0x1da8   :  { %1608 = vadd.xlane.f32.xlu1 %v1607_v63  ;;  %v1756_v19 = vpop.f32.mrb[44].mxu1 }
0x1da9   :  { %v2165_v13 = vpop.f32.mrb[45].mxu1 }
0x1e31   :  { %v1590_v33 = vpop.xlane.xlu1 %1589 }
0x1e32   :  { %v1591_v4 = vsub.f32 %v1582_v60, %v1590_v33 }
0x1e34   :  { %v1592_v1 = vmul.f32 1.442695, %v1591_v4 }
0x1e35   :  { %v1609_v9 = vpop.xlane.xlu1 %1608 }
0x1e36   :  { %2242 = vpow2.f32 %v1592_v1 }
0x1e40   :  { %v2243_v7 = vpop.eup %2242 }
0x1e41   :  { %v1594_v2 = vsel %vm1587_vm8, %v2243_v7, 0.0 }
0x1e42   :  { %1595 = vadd.xlane.f32.xlu0 %v1594_v2 }
0x1ecf   :  { %v1596_v8 = vpop.xlane.xlu0 %1595 }
0x1ed0   :  { %2244 = vlog2.f32 %v1596_v8 }
0x1ed1   :  { %2246 = vrcp.f32 %v1756_v19 }
0x1eda   :  { %v2245_v10 = vpop.eup %2244 }
0x1edb   :  { %v1598_v12 = vmul.f32 0.6931472, %v2245_v10  ;;  %v2247_v21 = vpop.eup %2246 }
0x1edd   :  { %v1610_v49 = vadd.f32 %v1598_v12, %v1590_v33 }
0x1edf   :  { %v1611_v16 = vsub.f32 %v1610_v49, %v1609_v9 }
0x1ee1   :  { %v1616_v18 = vmul.f32 %v1927_v14, %v1611_v16 }
0x1ee3   :  { %2157 = vmatpush3.msra.mxu0 %v1616_v18 }
0x1ee4   :  { %2166 = vmatprep.subr.mxu0 %v2396_v0  ;;  %2159 = vmatmul.mubr.msk.f32.vlgmr.msra.gmra.mrb[44].mxu0 %vm282_vm5, %v1615_v3 }
0x1ee5   :  { %2167 = vmatpush3.msra.mxu0 %v1777_v11  ;;  %2168 = vmatprep.mubr.msk.f32.mxu0 %vm2397_vm0, %v2396_v0 }
0x1ee8   :  { %2169 = vmatmul.mubr.msk.f32.vlgmr.msra.gmra.mrb[46].mxu0 %vm282_vm5, %v1776_v20 }
0x1fb7   :  { %v1686_v28 = vpop.f32.mrb[44].mxu0 }
0x1fb8   :  { %v1761_v22 = vmul.f32 %v2247_v21, %v1686_v28  ;;  %v2160_v15 = vpop.f32.mrb[45].mxu0 }
0x1fba   :  { %v1763_v23 = vsel %vm1762_vm11, %v1761_v22, 0.0 }
0x1fbb   :  { %1764 = vadd.xlane.f32.xlu1 %v1763_v23  ;;  %v1847_v24 = vpop.f32.mrb[46].mxu0 }
0x1fbc   :  { %v2170_v25 = vpop.f32.mrb[47].mxu0  ;;  %1852 = vst.msk [vmem:[#allocation13] sm:$0x7] %vm1851_vm12, %v1847_v24 }
0x1fbd   :  { %2347 = shalt.err (!%p2344_p8)
}
0x1fbe   :  { %s2348_s3 = scalar_lea.hbm %s2926_s14, 64 }
0x1fbf   :  { %p2349_p9 = scmp.ne.s32.totalorder %s2926_s14, %s2348_s3  ;;  %p2352_p10 = scmp.lt.u32.totalorder %s2348_s3, %s2926_s14 }
0x1fc1   :  { %p2354_p11 = pnand %p2352_p10, %p2349_p9 }
0x1fc3   :  { %2357 = shalt.err (!%p2354_p11)
}
0x1fc4   :  { %1862 = dma.vmem_to_hbm [thread:$0]  %s1860_s0, 64, %s2926_s14, [#allocation7]   ;;  %vm1774_vm13 = vcmask 0  }
0x1fc5   :  { %s2407_s6 = smov [#allocation14]  }
0x1fc6   :  { %s1869_s17 = sshll.u32 %s2407_s6, 4  ;;  %s1870_s17 = int_to_ptr.vmem [resolvable:$true] %s1869_s17 }
0x1fc7   :  { %s2358_s15 = scalar_lea.vmem %s1870_s17, 16  ;;  %s2362_s22 = scalar_lea.vmem %s1870_s17, 32 }
0x1fc8   :  { %p2359_p12 = scmp.ne.s32.totalorder %s1870_s17, %s2358_s15  ;;  %p2363_p13 = scmp.lt.s32.totalorder %s1870_s17, %s1870_s17 }
0x1fc9   :  { %p2364_p0 = scmp.lt.s32.totalorder %s2362_s22, %s2358_s15 }
0x1fcb   :  { %p2365_p1 = por %p2364_p0, %p2363_p13 }
0x1fcd   :  { %p2366_p2 = pnand %p2365_p1, %p2359_p12 }
0x2048   :  { %v1765_v0 = vpop.xlane.xlu1 %1764 }
0x2049   :  { %v1766_v26 = vrot.slane %v1765_v0, 4 }
0x204b   :  { %v1767_v27 = vadd.f32 %v1766_v26, %v1765_v0 }
0x204d   :  { %v1768_v30 = vrot.slane %v1767_v27, 2 }
0x204f   :  { %v1769_v31 = vadd.f32 %v1768_v30, %v1767_v27 }
0x2051   :  { %v1770_v34 = vrot.slane %v1769_v31, 1 }
0x2053   :  { %v1771_v35 = vadd.f32 %v1770_v34, %v1769_v31 }
0x2055   :  { %2171 = vpush %v1771_v35 }
0x2086   :  { %s2172_s20 = spop %2171 }
0x2087   :  { %v1773_v36 = vstv %s2172_s20 }
0x2088   :  { %1775 = vst.msk [vmem:[#allocation14] sm:$0x1] %vm1774_vm13, %v1773_v36 }
0x2089   :  { %2369 = shalt.err (!%p2366_p2)
}
0x208a   :  { %s2930_s28 = sld [smem:[#allocation21_spill]] }
0x2090   :  { %s2370_s23 = scalar_lea.hbm %s2930_s28, 16 }
0x2091   :  { %p2371_p3 = scmp.ne.s32.totalorder %s2930_s28, %s2370_s23  ;;  %p2374_p4 = scmp.lt.u32.totalorder %s2370_s23, %s2930_s28 }
0x2093   :  { %p2376_p5 = pnand %p2374_p4, %p2371_p3 }
0x2095   :  { %2379 = shalt.err (!%p2376_p5)
}
0x2096   :  { %1872 = dma.vmem_to_hbm [thread:$0]  %s1870_s17, 16, %s2930_s28, [#allocation15]  }
0x2097   :  { %2386 = dma.done.wait [#allocation7], 64  }
0x2098   :  { %2387 = vsyncadd [#allocation7], 4294967232 }
0x2099   :  { %2388 = dma.done.wait [#allocation15], 16  }
0x209a   :  { %2389 = vsyncadd [#allocation15], 4294967280 }
0x209b   :  { %1879 = vsyncpa [#allocation6], 1 }
0x209c   :  { %1880 = vsyncpa [#allocation9], 1 }
0x209d   :  { %1881 = vsyncpa [#allocation12], 1 }
0x209e   :  { %1882 = vsyncpa [#allocation7], 1 }
0x209f   :  { %1883 = vsyncpa [#allocation15], 1 }

</bundles_post_ra>
